<compile_context>
chip_gen: v5e
topology: v5e:2x2
jax: 0.10.0
libtpu: 0.0.40
codegen_flags: <defaults>
</compile_context>

<pallas_src>
import functools

import jax
import jax.numpy as jnp
from jax.experimental import pallas as pl
from jax.experimental.pallas import tpu as pltpu


def _round_up(x, m):
    return (x + m - 1) // m * m


def _tpu_generation_info():
    """(vmem_limit_bytes, num_tensorcores) with conservative fallbacks."""
    try:
        kind = jax.devices()[0].device_kind.lower()
    except Exception:
        kind = ""
    try:
        cap = int(pltpu.get_tpu_info().vmem_capacity_bytes)
    except Exception:
        cap = 64 << 20  # conservative (v7x-sized) fallback
    limit = max(32 << 20, min(cap - (16 << 20), 112 << 20))
    if "v7" in kind:
        limit = min(limit, 48 << 20)  # 64 MiB/TC physical on v7x
        num_tc = 2
    elif ("v4" in kind or "v5p" in kind) and "lite" not in kind:
        num_tc = 2
    elif "v5" in kind and "lite" not in kind and "v5e" not in kind:
        num_tc = 2  # v5p
    else:
        num_tc = 1  # v5e / v6e: single TensorCore, grid is a serial loop
    return limit, num_tc


def _choose_batch_block(batch, per_batch_bytes, budget_bytes, num_tc):
    """Largest divisor of `batch` whose estimated VMEM footprint fits.

    On multi-TC chips prefer a step count that splits evenly over the cores;
    on single-TC chips just maximise the block (fewer steps = less overhead).
    """
    divisors = [d for d in range(1, batch + 1) if batch % d == 0]
    feasible = [d for d in divisors if d * per_batch_bytes <= budget_bytes]
    if not feasible:
        return 1
    if num_tc > 1 and batch >= num_tc:
        balanced = [d for d in feasible if (batch // d) % num_tc == 0]
        if balanced:
            return max(balanced)
    return max(feasible)


def _sinkhorn_kernel(scores_ref, row_inv_ref, col_inv_ref, log_mu_ref,
                     log_nu_ref, alpha_ref, out_ref, slab_ref,
                     *, num_iterations, num_rows, num_cols, neg_inf):
    """Log-domain Sinkhorn with dust bins on a (Bb, Mp_pad, Np_pad) slab.

    scores_ref : (Bb, M, N)        raw scores (unpadded)
    row_inv_ref: (Bb, Mp_pad, 1)   1.0 = invalid row (user mask or padding)
    col_inv_ref: (Bb, 1, Np_pad)   1.0 = invalid col (user mask or padding)
    log_mu_ref : (Bb, Mp_pad, 1)   row log-marginals (-1e12 at invalid rows)
    log_nu_ref : (Bb, 1, Np_pad)   col log-marginals, ALREADY shifted by -norm
    alpha_ref  : (1, 1)            learnable dust-bin score
    out_ref    : (Bb, M+1, N+1)    log matching scores
    slab_ref   : (Bb, Mp_pad, Np_pad) VMEM staging scratch
    """
    bb, mpp, npp = slab_ref.shape
    mp = num_rows + 1
    np_ = num_cols + 1

    # ---- Build the padded + masked slab in VMEM (no HBM slab traffic). ----
    # Everything starts as alpha (covers dust-bin row/col), raw scores land in
    # the top-left (M, N) corner, then invalid rows/cols and alignment padding
    # are replaced with the finite -1e12 sentinel (finiteness is load-bearing:
    # a true -inf would give exp(-inf - -inf) = NaN for fully masked rows).
    slab_ref[...] = jnp.broadcast_to(alpha_ref[...],
                                     (bb, mpp, npp)).astype(jnp.float32)
    slab_ref[:, :num_rows, :num_cols] = scores_ref[...]
    invalid = (row_inv_ref[...] + col_inv_ref[...]) > 0.5
    s = jnp.where(invalid, neg_inf, slab_ref[...])
    slab_ref[...] = s  # keep the masked slab for the epilogue

    # ---- One-time stabilisers + exp slabs (2 slab exps total, instead of
    # 2 per iteration: the single-slot EUP was the saturating unit). --------
    rmax = jnp.max(s, axis=2, keepdims=True)      # (bb, mpp, 1)   XLU, once
    cmax = jnp.max(s, axis=1, keepdims=True)      # (bb, 1, npp)   XLU, once
    e_slab = jnp.exp(s - rmax)                    # row-stabilised, in [0, 1]
    f_slab = jnp.exp(s - cmax)                    # col-stabilised, in [0, 1]

    log_mu = log_mu_ref[...]                      # (bb, mpp, 1)
    log_nu = log_nu_ref[...]                      # (bb, 1, npp)  (has -norm)
    tiny = jnp.float32(1e-30)                     # log(0) guard (pathological)

    u = jnp.zeros_like(log_mu)
    v = jnp.zeros_like(log_nu)
    # num_iterations is a compile-time constant -> fully unrolled so the LLO
    # scheduler can overlap MXU / XLU / small-vector EUP work across steps.
    for _ in range(num_iterations):
        # u = log_mu - lse_j(s + v)
        #   = log_mu - (rowmax + max(v) + log(E @ exp(v - max(v))))   [MXU sum]
        vmax = jnp.max(v, axis=2, keepdims=True)                    # (bb,1,1)
        wv = jnp.exp(v - vmax)                                      # (bb,1,npp)
        rsum = jnp.einsum('bmn,bkn->bmk', e_slab, wv,
                          preferred_element_type=jnp.float32)       # (bb,mpp,1)
        u = log_mu - (rmax + vmax + jnp.log(jnp.maximum(rsum, tiny)))
        # v = log_nu' - lse_i(s + u)
        #   = log_nu' - (colmax + max(u) + log(sum_i F * exp(u - max(u))))
        umax = jnp.max(u, axis=1, keepdims=True)                    # (bb,1,1)
        wu = jnp.exp(u - umax)                                      # (bb,mpp,1)
        csum = jnp.sum(f_slab * wu, axis=1, keepdims=True)          # (bb,1,npp)
        v = log_nu - (cmax + umax + jnp.log(jnp.maximum(csum, tiny)))

    # log_nu was pre-shifted by -norm in the wrapper; the shift telescopes so
    # (s + u + v) here equals the reference (s + u_ref + v_ref - norm).
    out_full = slab_ref[...] + u + v
    out_ref[...] = out_full[:, :mp, :np_].astype(out_ref.dtype)


def learnable_log_sinkhorn(scores, alpha, row_masks=None, col_masks=None,
                           *, num_iterations=5, inf=1.0e12):
    """JAX/Pallas equivalent of LearnableLogSinkhorn.forward.

    scores: (B, M, N) float32, row_masks: (B, M) bool, col_masks: (B, N) bool.
    Returns (B, M+1, N+1) float32 log matching scores.
    """
    scores = scores.astype(jnp.float32)
    B, M, N = scores.shape
    Mp, Np = M + 1, N + 1
    Mpp = _round_up(Mp, 8)       # sublane-aligned slab height
    Npp = _round_up(Np, 128)     # lane-aligned slab width
    neg_inf = float(-inf)

    # ---- Tiny per-row / per-col vectors (O(B*(M+N)); no slab-sized XLA ops).
    row_invalid = jnp.zeros((B, Mp), dtype=bool)
    col_invalid = jnp.zeros((B, Np), dtype=bool)
    if row_masks is not None:
        row_invalid = row_invalid.at[:, :M].set(~row_masks)
    if col_masks is not None:
        col_invalid = col_invalid.at[:, :N].set(~col_masks)

    num_valid_row = jnp.float32(M) - row_invalid.sum(1).astype(jnp.float32)
    num_valid_col = jnp.float32(N) - col_invalid.sum(1).astype(jnp.float32)
    norm = -jnp.log(num_valid_row + num_valid_col)                    # (B,)

    log_mu = jnp.concatenate(
        [jnp.broadcast_to(norm[:, None], (B, M)),
         (jnp.log(num_valid_col) + norm)[:, None]], axis=1)           # (B, Mp)
    log_mu = jnp.where(row_invalid, neg_inf, log_mu)
    log_nu = jnp.concatenate(
        [jnp.broadcast_to(norm[:, None], (B, N)),
         (jnp.log(num_valid_row) + norm)[:, None]], axis=1)           # (B, Np)
    log_nu = jnp.where(col_invalid, neg_inf, log_nu)
    # Fold the module's trailing "- norm" into log_nu: the shift telescopes
    # through the iteration, so the kernel's (s + u + v) is already the
    # module's output (no per-batch norm input, no epilogue pass).
    log_nu = log_nu - norm[:, None]

    # Alignment padding behaves like masked rows/cols.
    log_mu = jnp.pad(log_mu, ((0, 0), (0, Mpp - Mp)), constant_values=neg_inf)
    log_nu = jnp.pad(log_nu, ((0, 0), (0, Npp - Np)), constant_values=neg_inf)
    row_inv_f = jnp.pad(row_invalid.astype(jnp.float32),
                        ((0, 0), (0, Mpp - Mp)), constant_values=1.0)
    col_inv_f = jnp.pad(col_invalid.astype(jnp.float32),
                        ((0, 0), (0, Npp - Np)), constant_values=1.0)

    log_mu3 = log_mu[:, :, None]          # (B, Mpp, 1)
    log_nu3 = log_nu[:, None, :]          # (B, 1, Npp)
    row_inv3 = row_inv_f[:, :, None]      # (B, Mpp, 1)
    col_inv3 = col_inv_f[:, None, :]      # (B, 1, Npp)
    alpha_arr = jnp.reshape(jnp.asarray(alpha, dtype=jnp.float32), (1, 1))

    # ---- Generation-aware tiling. -----------------------------------------
    slab_bytes = 4 * Mpp * Npp
    vmem_limit, num_tc = _tpu_generation_info()
    budget = int(vmem_limit * 0.85)
    # ~9 f32 slabs / batch element: double-buffered in & out blocks, the
    # staging scratch, E, F, and slab-sized temporaries during construction.
    per_batch = 9 * slab_bytes
    bb = _choose_batch_block(B, per_batch, budget, num_tc)

    # Even a single batch element is VMEM-tight -> drop to single-buffered
    # pipelining on the big operands (kernel is strongly compute-bound, so the
    # exposed DMA is negligible).
    buffered_single = per_batch > budget
    # TODO(synk): if one (Mpp, Npp) working set still exceeds the v7x budget
    # (M, N ≳ 1500), tile Mp over a second grid axis with carried column
    # partial sums; not implemented here.

    def big_spec(block, imap):
        if buffered_single:
            return pl.BlockSpec(block, imap, pipeline_mode=pl.Buffered(1))
        return pl.BlockSpec(block, imap)

    kernel = functools.partial(
        _sinkhorn_kernel, num_iterations=int(num_iterations),
        num_rows=M, num_cols=N, neg_inf=neg_inf)

    out = pl.pallas_call(
        kernel,
        out_shape=jax.ShapeDtypeStruct((B, Mp, Np), jnp.float32),
        grid_spec=pltpu.PrefetchScalarGridSpec(
            num_scalar_prefetch=0,
            grid=(B // bb,),
            in_specs=[
                big_spec((bb, M, N), lambda b: (b, 0, 0)),        # raw scores
                pl.BlockSpec((bb, Mpp, 1), lambda b: (b, 0, 0)),  # row invalid
                pl.BlockSpec((bb, 1, Npp), lambda b: (b, 0, 0)),  # col invalid
                pl.BlockSpec((bb, Mpp, 1), lambda b: (b, 0, 0)),  # log_mu
                pl.BlockSpec((bb, 1, Npp), lambda b: (b, 0, 0)),  # log_nu'
                pl.BlockSpec((1, 1), lambda b: (0, 0)),           # alpha
            ],
            out_specs=big_spec((bb, Mp, Np), lambda b: (b, 0, 0)),
            scratch_shapes=[pltpu.VMEM((bb, Mpp, Npp), jnp.float32)],
        ),
        compiler_params=pltpu.CompilerParams(
            dimension_semantics=("parallel",),
            vmem_limit_bytes=vmem_limit),
    )(scores, row_inv3, col_inv3, log_mu3, log_nu3, alpha_arr)
    return out


def _reference(scores, alpha, row_masks, col_masks, num_iterations, inf=1.0e12):
    """Pure-JAX reference mirroring the PyTorch module exactly."""
    B, M, N = scores.shape
    Mp, Np = M + 1, N + 1
    prm = jnp.zeros((B, Mp), dtype=bool).at[:, :M].set(~row_masks)
    pcm = jnp.zeros((B, Np), dtype=bool).at[:, :N].set(~col_masks)
    psm = prm[:, :, None] | pcm[:, None, :]
    ps = jnp.concatenate(
        [jnp.concatenate([scores, jnp.broadcast_to(alpha, (B, M, 1))], axis=-1),
         jnp.broadcast_to(alpha, (B, 1, Np))], axis=1)
    ps = jnp.where(psm, -inf, ps)
    nvr = M - prm.sum(1).astype(jnp.float32)
    nvc = N - pcm.sum(1).astype(jnp.float32)
    norm = -jnp.log(nvr + nvc)
    log_mu = jnp.concatenate(
        [jnp.broadcast_to(norm[:, None], (B, M)),
         (jnp.log(nvc) + norm)[:, None]], axis=1)
    log_mu = jnp.where(prm, -inf, log_mu)
    log_nu = jnp.concatenate(
        [jnp.broadcast_to(norm[:, None], (B, N)),
         (jnp.log(nvr) + norm)[:, None]], axis=1)
    log_nu = jnp.where(pcm, -inf, log_nu)

    def lse(x, axis):
        m = jnp.max(x, axis=axis, keepdims=True)
        return (m + jnp.log(jnp.sum(jnp.exp(x - m), axis=axis,
                                    keepdims=True))).squeeze(axis)

    u = jnp.zeros_like(log_mu)
    v = jnp.zeros_like(log_nu)
    for _ in range(num_iterations):
        u = log_mu - lse(ps + v[:, None, :], axis=2)
        v = log_nu - lse(ps + u[:, :, None], axis=1)
    out = ps + u[:, :, None] + v[:, None, :]
    return out - norm[:, None, None]


if __name__ == "__main__":
    key = jax.random.PRNGKey(0)
    num_iterations = 5
    # Parameter init matches torch.nn.Parameter(torch.tensor(1.0)).
    alpha = jnp.float32(1.0)

    k1, k2, k3, k4, k5, k6, k7 = jax.random.split(key, 7)

    # Case 1: B=2, M=N=8 (dust-bin slab 9x9, padded to 16x128 internally).
    B, M, N = 2, 8, 8
    scores = jax.random.normal(k1, (B, M, N), dtype=jnp.float32)
    row_masks = jax.random.bernoulli(k2, 0.85, (B, M))
    col_masks = jax.random.bernoulli(k3, 0.85, (B, N))
    out = learnable_log_sinkhorn(scores, alpha, row_masks, col_masks,
                                 num_iterations=num_iterations)
    out = jax.block_until_ready(out)
    ref = _reference(scores, alpha, row_masks, col_masks, num_iterations)
    assert out.shape == (B, M + 1, N + 1)
    assert jnp.allclose(out, ref, rtol=1e-3, atol=1e-3), "mismatch (case 1)"

    # Case 2: non-square with heavier masking (padding + masking paths).
    B2, M2, N2 = 2, 12, 20
    scores2 = jax.random.normal(k4, (B2, M2, N2), dtype=jnp.float32)
    row_masks2 = jax.random.bernoulli(k5, 0.7, (B2, M2))
    col_masks2 = jax.random.bernoulli(k6, 0.7, (B2, N2))
    out2 = learnable_log_sinkhorn(scores2, alpha, row_masks2, col_masks2,
                                  num_iterations=num_iterations)
    out2 = jax.block_until_ready(out2)
    ref2 = _reference(scores2, alpha, row_masks2, col_masks2, num_iterations)
    assert out2.shape == (B2, M2 + 1, N2 + 1)
    assert jnp.allclose(out2, ref2, rtol=1e-3, atol=1e-3), "mismatch (case 2)"

    # Case 3: no masks at all (default-argument path).
    B3, M3, N3 = 2, 16, 8
    scores3 = jax.random.normal(k7, (B3, M3, N3), dtype=jnp.float32)
    out3 = learnable_log_sinkhorn(scores3, alpha, None, None,
                                  num_iterations=num_iterations)
    out3 = jax.block_until_ready(out3)
    ref3 = _reference(scores3, alpha,
                      jnp.ones((B3, M3), dtype=bool),
                      jnp.ones((B3, N3), dtype=bool), num_iterations)
    assert jnp.allclose(out3, ref3, rtol=1e-3, atol=1e-3), "mismatch (case 3)"

    print("KERNEL_OK")
</pallas_src>

<mosaic_0001>
module attributes {stable_mosaic.version = 11 : i64} {
  func.func @_sinkhorn_kernel(%arg0: i32, %arg1: memref<2x8x8xf32, #tpu.memory_space<vmem>>, %arg2: memref<2x16x1xf32, #tpu.memory_space<vmem>>, %arg3: memref<2x1x128xf32, #tpu.memory_space<vmem>>, %arg4: memref<2x16x1xf32, #tpu.memory_space<vmem>>, %arg5: memref<2x1x128xf32, #tpu.memory_space<vmem>>, %arg6: memref<1x1xf32, #tpu.memory_space<vmem>>, %arg7: memref<2x9x9xf32, #tpu.memory_space<vmem>>, %arg8: memref<2x16x128xf32, #tpu.memory_space<vmem>>) attributes {dimension_semantics = [#tpu.dimension_semantics<parallel>], iteration_bounds = array<i64: 1>, scalar_prefetch = 0 : i64, scratch_operands = 1 : i64, tpu.core_type = #tpu.core_type<tc>, window_params = [{transform_indices = @transform_0, window_bounds = array<i64: 2, 8, 8>}, {transform_indices = @transform_1, window_bounds = array<i64: 2, 16, 1>}, {transform_indices = @transform_2, window_bounds = array<i64: 2, 1, 128>}, {transform_indices = @transform_3, window_bounds = array<i64: 2, 16, 1>}, {transform_indices = @transform_4, window_bounds = array<i64: 2, 1, 128>}, {pipeline_mode = #tpu.pipeline_mode<synchronous>, transform_indices = @transform_5, window_bounds = array<i64: 1, 1>}, {transform_indices = @transform_6, window_bounds = array<i64: 2, 9, 9>}]} {
    %c0 = arith.constant 0 : index
    %c0_0 = arith.constant 0 : index
    %0 = vector.load %arg6[%c0, %c0_0] : memref<1x1xf32, #tpu.memory_space<vmem>>, vector<1x1xf32>
    %1 = vector.shape_cast %0 : vector<1x1xf32> to vector<1x1x1xf32>
    %2 = vector.broadcast %1 : vector<1x1x1xf32> to vector<2x16x128xf32>
    %c0_1 = arith.constant 0 : index
    %c0_2 = arith.constant 0 : index
    %c0_3 = arith.constant 0 : index
    %3 = vector.load %arg8[%c0_1, %c0_2, %c0_3] : memref<2x16x128xf32, #tpu.memory_space<vmem>>, vector<2x16x128xf32>
    tpu.vector_store %arg8[%c0_1, %c0_2, %c0_3], %2 {strides = array<i32>} : memref<2x16x128xf32, #tpu.memory_space<vmem>>, vector<2x16x128xf32>,
    %c0_4 = arith.constant 0 : index
    %c0_5 = arith.constant 0 : index
    %c0_6 = arith.constant 0 : index
    %4 = vector.load %arg1[%c0_4, %c0_5, %c0_6] : memref<2x8x8xf32, #tpu.memory_space<vmem>>, vector<2x8x8xf32>
    %c0_7 = arith.constant 0 : index
    %c0_8 = arith.constant 0 : index
    %c0_9 = arith.constant 0 : index
    %5 = vector.load %arg8[%c0_7, %c0_8, %c0_9] : memref<2x16x128xf32, #tpu.memory_space<vmem>>, vector<2x8x8xf32>
    tpu.vector_store %arg8[%c0_7, %c0_8, %c0_9], %4 {strides = array<i32>} : memref<2x16x128xf32, #tpu.memory_space<vmem>>, vector<2x8x8xf32>,
    %c0_10 = arith.constant 0 : index
    %c0_11 = arith.constant 0 : index
    %c0_12 = arith.constant 0 : index
    %6 = vector.load %arg2[%c0_10, %c0_11, %c0_12] : memref<2x16x1xf32, #tpu.memory_space<vmem>>, vector<2x16x1xf32>
    %c0_13 = arith.constant 0 : index
    %c0_14 = arith.constant 0 : index
    %c0_15 = arith.constant 0 : index
    %7 = vector.load %arg3[%c0_13, %c0_14, %c0_15] : memref<2x1x128xf32, #tpu.memory_space<vmem>>, vector<2x1x128xf32>
    %8 = vector.broadcast %6 : vector<2x16x1xf32> to vector<2x16x128xf32>
    %9 = vector.broadcast %7 : vector<2x1x128xf32> to vector<2x16x128xf32>
    %10 = arith.addf %8, %9 : vector<2x16x128xf32>
    %cst = arith.constant 5.000000e-01 : f32
    %11 = vector.broadcast %cst : f32 to vector<2x16x128xf32>
    %12 = arith.cmpf ogt, %10, %11 : vector<2x16x128xf32>
    %c0_16 = arith.constant 0 : index
    %c0_17 = arith.constant 0 : index
    %c0_18 = arith.constant 0 : index
    %13 = vector.load %arg8[%c0_16, %c0_17, %c0_18] : memref<2x16x128xf32, #tpu.memory_space<vmem>>, vector<2x16x128xf32>
    %cst_19 = arith.constant -9.99999995E+11 : f32
    %14 = vector.broadcast %cst_19 : f32 to vector<2x16x128xf32>
    %15 = arith.select %12, %14, %13 : vector<2x16x128xi1>, vector<2x16x128xf32>
    %c0_20 = arith.constant 0 : index
    %c0_21 = arith.constant 0 : index
    %c0_22 = arith.constant 0 : index
    %16 = vector.load %arg8[%c0_20, %c0_21, %c0_22] : memref<2x16x128xf32, #tpu.memory_space<vmem>>, vector<2x16x128xf32>
    tpu.vector_store %arg8[%c0_20, %c0_21, %c0_22], %15 {strides = array<i32>} : memref<2x16x128xf32, #tpu.memory_space<vmem>>, vector<2x16x128xf32>,
    %cst_23 = arith.constant dense<0xFF800000> : vector<2x16xf32>
    %17 = vector.multi_reduction <maximumf>, %15, %cst_23 [2] : vector<2x16x128xf32> to vector<2x16xf32>
    %18 = vector.shape_cast %17 : vector<2x16xf32> to vector<2x16x1xf32>
    %cst_24 = arith.constant dense<0xFF800000> : vector<2x128xf32>
    %19 = vector.multi_reduction <maximumf>, %15, %cst_24 [1] : vector<2x16x128xf32> to vector<2x128xf32>
    %20 = vector.shape_cast %19 : vector<2x128xf32> to vector<2x1x128xf32>
    %21 = vector.broadcast %18 : vector<2x16x1xf32> to vector<2x16x128xf32>
    %22 = arith.subf %15, %21 : vector<2x16x128xf32>
    %23 = math.exp %22 : vector<2x16x128xf32>
    %24 = vector.broadcast %20 : vector<2x1x128xf32> to vector<2x16x128xf32>
    %25 = arith.subf %15, %24 : vector<2x16x128xf32>
    %26 = math.exp %25 : vector<2x16x128xf32>
    %c0_25 = arith.constant 0 : index
    %c0_26 = arith.constant 0 : index
    %c0_27 = arith.constant 0 : index
    %27 = vector.load %arg4[%c0_25, %c0_26, %c0_27] : memref<2x16x1xf32, #tpu.memory_space<vmem>>, vector<2x16x1xf32>
    %c0_28 = arith.constant 0 : index
    %c0_29 = arith.constant 0 : index
    %c0_30 = arith.constant 0 : index
    %28 = vector.load %arg5[%c0_28, %c0_29, %c0_30] : memref<2x1x128xf32, #tpu.memory_space<vmem>>, vector<2x1x128xf32>
    %cst_31 = arith.constant 0.000000e+00 : f32
    %29 = vector.broadcast %cst_31 : f32 to vector<2x1x128xf32>
    %cst_32 = arith.constant dense<0xFF800000> : vector<2x1xf32>
    %30 = vector.multi_reduction <maximumf>, %29, %cst_32 [2] : vector<2x1x128xf32> to vector<2x1xf32>
    %31 = vector.shape_cast %30 : vector<2x1xf32> to vector<2x1x1xf32>
    %32 = vector.broadcast %31 : vector<2x1x1xf32> to vector<2x1x128xf32>
    %33 = arith.subf %29, %32 : vector<2x1x128xf32>
    %34 = math.exp %33 : vector<2x1x128xf32>
    "tpu.trace_start"() <{level = 10 : i32, message = "bmn,bkn->bmk"}> : () -> ()
    %cst_33 = arith.constant dense<0.000000e+00> : vector<2x16x1xf32>
    %35 = tpu.matmul %23, %34, %cst_33 {dimension_numbers = #tpu.dot_dimension_numbers<[2], [2], [1], [1], [0, 0, 0, 1, 1, 1], [0], [0]>} : vector<2x16x128xf32>, vector<2x1x128xf32>, vector<2x16x1xf32> -> vector<2x16x1xf32>
    "tpu.trace_stop"() : () -> ()
    %36 = vector.broadcast %31 : vector<2x1x1xf32> to vector<2x16x1xf32>
    %37 = arith.addf %18, %36 : vector<2x16x1xf32>
    %cst_34 = arith.constant 1.000000e-30 : f32
    %38 = vector.broadcast %cst_34 : f32 to vector<2x16x1xf32>
    %39 = arith.maximumf %35, %38 : vector<2x16x1xf32>
    %40 = math.log %39 : vector<2x16x1xf32>
    %41 = arith.addf %37, %40 : vector<2x16x1xf32>
    %42 = arith.subf %27, %41 : vector<2x16x1xf32>
    %cst_35 = arith.constant dense<0xFF800000> : vector<2x1xf32>
    %43 = vector.multi_reduction <maximumf>, %42, %cst_35 [1] : vector<2x16x1xf32> to vector<2x1xf32>
    %44 = vector.shape_cast %43 : vector<2x1xf32> to vector<2x1x1xf32>
    %45 = vector.broadcast %44 : vector<2x1x1xf32> to vector<2x16x1xf32>
    %46 = arith.subf %42, %45 : vector<2x16x1xf32>
    %47 = math.exp %46 : vector<2x16x1xf32>
    %48 = vector.broadcast %47 : vector<2x16x1xf32> to vector<2x16x128xf32>
    %49 = arith.mulf %26, %48 : vector<2x16x128xf32>
    %cst_36 = arith.constant dense<0.000000e+00> : vector<2x128xf32>
    %50 = vector.multi_reduction <add>, %49, %cst_36 [1] : vector<2x16x128xf32> to vector<2x128xf32>
    %51 = vector.shape_cast %50 : vector<2x128xf32> to vector<2x1x128xf32>
    %52 = vector.broadcast %44 : vector<2x1x1xf32> to vector<2x1x128xf32>
    %53 = arith.addf %20, %52 : vector<2x1x128xf32>
    %cst_37 = arith.constant 1.000000e-30 : f32
    %54 = vector.broadcast %cst_37 : f32 to vector<2x1x128xf32>
    %55 = arith.maximumf %51, %54 : vector<2x1x128xf32>
    %56 = math.log %55 : vector<2x1x128xf32>
    %57 = arith.addf %53, %56 : vector<2x1x128xf32>
    %58 = arith.subf %28, %57 : vector<2x1x128xf32>
    %cst_38 = arith.constant dense<0xFF800000> : vector<2x1xf32>
    %59 = vector.multi_reduction <maximumf>, %58, %cst_38 [2] : vector<2x1x128xf32> to vector<2x1xf32>
    %60 = vector.shape_cast %59 : vector<2x1xf32> to vector<2x1x1xf32>
    %61 = vector.broadcast %60 : vector<2x1x1xf32> to vector<2x1x128xf32>
    %62 = arith.subf %58, %61 : vector<2x1x128xf32>
    %63 = math.exp %62 : vector<2x1x128xf32>
    "tpu.trace_start"() <{level = 10 : i32, message = "bmn,bkn->bmk"}> : () -> ()
    %cst_39 = arith.constant dense<0.000000e+00> : vector<2x16x1xf32>
    %64 = tpu.matmul %23, %63, %cst_39 {dimension_numbers = #tpu.dot_dimension_numbers<[2], [2], [1], [1], [0, 0, 0, 1, 1, 1], [0], [0]>} : vector<2x16x128xf32>, vector<2x1x128xf32>, vector<2x16x1xf32> -> vector<2x16x1xf32>
    "tpu.trace_stop"() : () -> ()
    %65 = vector.broadcast %60 : vector<2x1x1xf32> to vector<2x16x1xf32>
    %66 = arith.addf %18, %65 : vector<2x16x1xf32>
    %cst_40 = arith.constant 1.000000e-30 : f32
    %67 = vector.broadcast %cst_40 : f32 to vector<2x16x1xf32>
    %68 = arith.maximumf %64, %67 : vector<2x16x1xf32>
    %69 = math.log %68 : vector<2x16x1xf32>
    %70 = arith.addf %66, %69 : vector<2x16x1xf32>
    %71 = arith.subf %27, %70 : vector<2x16x1xf32>
    %cst_41 = arith.constant dense<0xFF800000> : vector<2x1xf32>
    %72 = vector.multi_reduction <maximumf>, %71, %cst_41 [1] : vector<2x16x1xf32> to vector<2x1xf32>
    %73 = vector.shape_cast %72 : vector<2x1xf32> to vector<2x1x1xf32>
    %74 = vector.broadcast %73 : vector<2x1x1xf32> to vector<2x16x1xf32>
    %75 = arith.subf %71, %74 : vector<2x16x1xf32>
    %76 = math.exp %75 : vector<2x16x1xf32>
    %77 = vector.broadcast %76 : vector<2x16x1xf32> to vector<2x16x128xf32>
    %78 = arith.mulf %26, %77 : vector<2x16x128xf32>
    %cst_42 = arith.constant dense<0.000000e+00> : vector<2x128xf32>
    %79 = vector.multi_reduction <add>, %78, %cst_42 [1] : vector<2x16x128xf32> to vector<2x128xf32>
    %80 = vector.shape_cast %79 : vector<2x128xf32> to vector<2x1x128xf32>
    %81 = vector.broadcast %73 : vector<2x1x1xf32> to vector<2x1x128xf32>
    %82 = arith.addf %20, %81 : vector<2x1x128xf32>
    %cst_43 = arith.constant 1.000000e-30 : f32
    %83 = vector.broadcast %cst_43 : f32 to vector<2x1x128xf32>
    %84 = arith.maximumf %80, %83 : vector<2x1x128xf32>
    %85 = math.log %84 : vector<2x1x128xf32>
    %86 = arith.addf %82, %85 : vector<2x1x128xf32>
    %87 = arith.subf %28, %86 : vector<2x1x128xf32>
    %cst_44 = arith.constant dense<0xFF800000> : vector<2x1xf32>
    %88 = vector.multi_reduction <maximumf>, %87, %cst_44 [2] : vector<2x1x128xf32> to vector<2x1xf32>
    %89 = vector.shape_cast %88 : vector<2x1xf32> to vector<2x1x1xf32>
    %90 = vector.broadcast %89 : vector<2x1x1xf32> to vector<2x1x128xf32>
    %91 = arith.subf %87, %90 : vector<2x1x128xf32>
    %92 = math.exp %91 : vector<2x1x128xf32>
    "tpu.trace_start"() <{level = 10 : i32, message = "bmn,bkn->bmk"}> : () -> ()
    %cst_45 = arith.constant dense<0.000000e+00> : vector<2x16x1xf32>
    %93 = tpu.matmul %23, %92, %cst_45 {dimension_numbers = #tpu.dot_dimension_numbers<[2], [2], [1], [1], [0, 0, 0, 1, 1, 1], [0], [0]>} : vector<2x16x128xf32>, vector<2x1x128xf32>, vector<2x16x1xf32> -> vector<2x16x1xf32>
    "tpu.trace_stop"() : () -> ()
    %94 = vector.broadcast %89 : vector<2x1x1xf32> to vector<2x16x1xf32>
    %95 = arith.addf %18, %94 : vector<2x16x1xf32>
    %cst_46 = arith.constant 1.000000e-30 : f32
    %96 = vector.broadcast %cst_46 : f32 to vector<2x16x1xf32>
    %97 = arith.maximumf %93, %96 : vector<2x16x1xf32>
    %98 = math.log %97 : vector<2x16x1xf32>
    %99 = arith.addf %95, %98 : vector<2x16x1xf32>
    %100 = arith.subf %27, %99 : vector<2x16x1xf32>
    %cst_47 = arith.constant dense<0xFF800000> : vector<2x1xf32>
    %101 = vector.multi_reduction <maximumf>, %100, %cst_47 [1] : vector<2x16x1xf32> to vector<2x1xf32>
    %102 = vector.shape_cast %101 : vector<2x1xf32> to vector<2x1x1xf32>
    %103 = vector.broadcast %102 : vector<2x1x1xf32> to vector<2x16x1xf32>
    %104 = arith.subf %100, %103 : vector<2x16x1xf32>
    %105 = math.exp %104 : vector<2x16x1xf32>
    %106 = vector.broadcast %105 : vector<2x16x1xf32> to vector<2x16x128xf32>
    %107 = arith.mulf %26, %106 : vector<2x16x128xf32>
    %cst_48 = arith.constant dense<0.000000e+00> : vector<2x128xf32>
    %108 = vector.multi_reduction <add>, %107, %cst_48 [1] : vector<2x16x128xf32> to vector<2x128xf32>
    %109 = vector.shape_cast %108 : vector<2x128xf32> to vector<2x1x128xf32>
    %110 = vector.broadcast %102 : vector<2x1x1xf32> to vector<2x1x128xf32>
    %111 = arith.addf %20, %110 : vector<2x1x128xf32>
    %cst_49 = arith.constant 1.000000e-30 : f32
    %112 = vector.broadcast %cst_49 : f32 to vector<2x1x128xf32>
    %113 = arith.maximumf %109, %112 : vector<2x1x128xf32>
    %114 = math.log %113 : vector<2x1x128xf32>
    %115 = arith.addf %111, %114 : vector<2x1x128xf32>
    %116 = arith.subf %28, %115 : vector<2x1x128xf32>
    %cst_50 = arith.constant dense<0xFF800000> : vector<2x1xf32>
    %117 = vector.multi_reduction <maximumf>, %116, %cst_50 [2] : vector<2x1x128xf32> to vector<2x1xf32>
    %118 = vector.shape_cast %117 : vector<2x1xf32> to vector<2x1x1xf32>
    %119 = vector.broadcast %118 : vector<2x1x1xf32> to vector<2x1x128xf32>
    %120 = arith.subf %116, %119 : vector<2x1x128xf32>
    %121 = math.exp %120 : vector<2x1x128xf32>
    "tpu.trace_start"() <{level = 10 : i32, message = "bmn,bkn->bmk"}> : () -> ()
    %cst_51 = arith.constant dense<0.000000e+00> : vector<2x16x1xf32>
    %122 = tpu.matmul %23, %121, %cst_51 {dimension_numbers = #tpu.dot_dimension_numbers<[2], [2], [1], [1], [0, 0, 0, 1, 1, 1], [0], [0]>} : vector<2x16x128xf32>, vector<2x1x128xf32>, vector<2x16x1xf32> -> vector<2x16x1xf32>
    "tpu.trace_stop"() : () -> ()
    %123 = vector.broadcast %118 : vector<2x1x1xf32> to vector<2x16x1xf32>
    %124 = arith.addf %18, %123 : vector<2x16x1xf32>
    %cst_52 = arith.constant 1.000000e-30 : f32
    %125 = vector.broadcast %cst_52 : f32 to vector<2x16x1xf32>
    %126 = arith.maximumf %122, %125 : vector<2x16x1xf32>
    %127 = math.log %126 : vector<2x16x1xf32>
    %128 = arith.addf %124, %127 : vector<2x16x1xf32>
    %129 = arith.subf %27, %128 : vector<2x16x1xf32>
    %cst_53 = arith.constant dense<0xFF800000> : vector<2x1xf32>
    %130 = vector.multi_reduction <maximumf>, %129, %cst_53 [1] : vector<2x16x1xf32> to vector<2x1xf32>
    %131 = vector.shape_cast %130 : vector<2x1xf32> to vector<2x1x1xf32>
    %132 = vector.broadcast %131 : vector<2x1x1xf32> to vector<2x16x1xf32>
    %133 = arith.subf %129, %132 : vector<2x16x1xf32>
    %134 = math.exp %133 : vector<2x16x1xf32>
    %135 = vector.broadcast %134 : vector<2x16x1xf32> to vector<2x16x128xf32>
    %136 = arith.mulf %26, %135 : vector<2x16x128xf32>
    %cst_54 = arith.constant dense<0.000000e+00> : vector<2x128xf32>
    %137 = vector.multi_reduction <add>, %136, %cst_54 [1] : vector<2x16x128xf32> to vector<2x128xf32>
    %138 = vector.shape_cast %137 : vector<2x128xf32> to vector<2x1x128xf32>
    %139 = vector.broadcast %131 : vector<2x1x1xf32> to vector<2x1x128xf32>
    %140 = arith.addf %20, %139 : vector<2x1x128xf32>
    %cst_55 = arith.constant 1.000000e-30 : f32
    %141 = vector.broadcast %cst_55 : f32 to vector<2x1x128xf32>
    %142 = arith.maximumf %138, %141 : vector<2x1x128xf32>
    %143 = math.log %142 : vector<2x1x128xf32>
    %144 = arith.addf %140, %143 : vector<2x1x128xf32>
    %145 = arith.subf %28, %144 : vector<2x1x128xf32>
    %cst_56 = arith.constant dense<0xFF800000> : vector<2x1xf32>
    %146 = vector.multi_reduction <maximumf>, %145, %cst_56 [2] : vector<2x1x128xf32> to vector<2x1xf32>
    %147 = vector.shape_cast %146 : vector<2x1xf32> to vector<2x1x1xf32>
    %148 = vector.broadcast %147 : vector<2x1x1xf32> to vector<2x1x128xf32>
    %149 = arith.subf %145, %148 : vector<2x1x128xf32>
    %150 = math.exp %149 : vector<2x1x128xf32>
    "tpu.trace_start"() <{level = 10 : i32, message = "bmn,bkn->bmk"}> : () -> ()
    %cst_57 = arith.constant dense<0.000000e+00> : vector<2x16x1xf32>
    %151 = tpu.matmul %23, %150, %cst_57 {dimension_numbers = #tpu.dot_dimension_numbers<[2], [2], [1], [1], [0, 0, 0, 1, 1, 1], [0], [0]>} : vector<2x16x128xf32>, vector<2x1x128xf32>, vector<2x16x1xf32> -> vector<2x16x1xf32>
    "tpu.trace_stop"() : () -> ()
    %152 = vector.broadcast %147 : vector<2x1x1xf32> to vector<2x16x1xf32>
    %153 = arith.addf %18, %152 : vector<2x16x1xf32>
    %cst_58 = arith.constant 1.000000e-30 : f32
    %154 = vector.broadcast %cst_58 : f32 to vector<2x16x1xf32>
    %155 = arith.maximumf %151, %154 : vector<2x16x1xf32>
    %156 = math.log %155 : vector<2x16x1xf32>
    %157 = arith.addf %153, %156 : vector<2x16x1xf32>
    %158 = arith.subf %27, %157 : vector<2x16x1xf32>
    %cst_59 = arith.constant dense<0xFF800000> : vector<2x1xf32>
    %159 = vector.multi_reduction <maximumf>, %158, %cst_59 [1] : vector<2x16x1xf32> to vector<2x1xf32>
    %160 = vector.shape_cast %159 : vector<2x1xf32> to vector<2x1x1xf32>
    %161 = vector.broadcast %160 : vector<2x1x1xf32> to vector<2x16x1xf32>
    %162 = arith.subf %158, %161 : vector<2x16x1xf32>
    %163 = math.exp %162 : vector<2x16x1xf32>
    %164 = vector.broadcast %163 : vector<2x16x1xf32> to vector<2x16x128xf32>
    %165 = arith.mulf %26, %164 : vector<2x16x128xf32>
    %cst_60 = arith.constant dense<0.000000e+00> : vector<2x128xf32>
    %166 = vector.multi_reduction <add>, %165, %cst_60 [1] : vector<2x16x128xf32> to vector<2x128xf32>
    %167 = vector.shape_cast %166 : vector<2x128xf32> to vector<2x1x128xf32>
    %168 = vector.broadcast %160 : vector<2x1x1xf32> to vector<2x1x128xf32>
    %169 = arith.addf %20, %168 : vector<2x1x128xf32>
    %cst_61 = arith.constant 1.000000e-30 : f32
    %170 = vector.broadcast %cst_61 : f32 to vector<2x1x128xf32>
    %171 = arith.maximumf %167, %170 : vector<2x1x128xf32>
    %172 = math.log %171 : vector<2x1x128xf32>
    %173 = arith.addf %169, %172 : vector<2x1x128xf32>
    %174 = arith.subf %28, %173 : vector<2x1x128xf32>
    %c0_62 = arith.constant 0 : index
    %c0_63 = arith.constant 0 : index
    %c0_64 = arith.constant 0 : index
    %175 = vector.load %arg8[%c0_62, %c0_63, %c0_64] : memref<2x16x128xf32, #tpu.memory_space<vmem>>, vector<2x16x128xf32>
    %176 = vector.broadcast %158 : vector<2x16x1xf32> to vector<2x16x128xf32>
    %177 = arith.addf %175, %176 : vector<2x16x128xf32>
    %178 = vector.broadcast %174 : vector<2x1x128xf32> to vector<2x16x128xf32>
    %179 = arith.addf %177, %178 : vector<2x16x128xf32>
    %180 = vector.extract_strided_slice %179 {offsets = [0, 0, 0], sizes = [2, 9, 9], strides = [1, 1, 1]} : vector<2x16x128xf32> to vector<2x9x9xf32>
    %c0_65 = arith.constant 0 : index
    %c0_66 = arith.constant 0 : index
    %c0_67 = arith.constant 0 : index
    %181 = vector.load %arg7[%c0_65, %c0_66, %c0_67] : memref<2x9x9xf32, #tpu.memory_space<vmem>>, vector<2x9x9xf32>
    tpu.vector_store %arg7[%c0_65, %c0_66, %c0_67], %180 {strides = array<i32>} : memref<2x9x9xf32, #tpu.memory_space<vmem>>, vector<2x9x9xf32>,
    return
  }
  func.func @transform_0(%arg0: i32) -> (i32, i32, i32) {
    %c0_i32 = arith.constant 0 : i32
    %c0_i32_0 = arith.constant 0 : i32
    %c0_i32_1 = arith.constant 0 : i32
    return %arg0, %c0_i32, %c0_i32_0 : i32, i32, i32
  }
  func.func @transform_1(%arg0: i32) -> (i32, i32, i32) {
    %c0_i32 = arith.constant 0 : i32
    %c0_i32_0 = arith.constant 0 : i32
    %c0_i32_1 = arith.constant 0 : i32
    return %arg0, %c0_i32, %c0_i32_0 : i32, i32, i32
  }
  func.func @transform_2(%arg0: i32) -> (i32, i32, i32) {
    %c0_i32 = arith.constant 0 : i32
    %c0_i32_0 = arith.constant 0 : i32
    %c0_i32_1 = arith.constant 0 : i32
    return %arg0, %c0_i32, %c0_i32_0 : i32, i32, i32
  }
  func.func @transform_3(%arg0: i32) -> (i32, i32, i32) {
    %c0_i32 = arith.constant 0 : i32
    %c0_i32_0 = arith.constant 0 : i32
    %c0_i32_1 = arith.constant 0 : i32
    return %arg0, %c0_i32, %c0_i32_0 : i32, i32, i32
  }
  func.func @transform_4(%arg0: i32) -> (i32, i32, i32) {
    %c0_i32 = arith.constant 0 : i32
    %c0_i32_0 = arith.constant 0 : i32
    %c0_i32_1 = arith.constant 0 : i32
    return %arg0, %c0_i32, %c0_i32_0 : i32, i32, i32
  }
  func.func @transform_5(%arg0: i32) -> (i32, i32) {
    %c0_i32 = arith.constant 0 : i32
    %c0_i32_0 = arith.constant 0 : i32
    %c0_i32_1 = arith.constant 0 : i32
    return %c0_i32, %c0_i32_0 : i32, i32
  }
  func.func @transform_6(%arg0: i32) -> (i32, i32, i32) {
    %c0_i32 = arith.constant 0 : i32
    %c0_i32_0 = arith.constant 0 : i32
    %c0_i32_1 = arith.constant 0 : i32
    return %arg0, %c0_i32, %c0_i32_0 : i32, i32, i32
  }
}

</mosaic_0001>

<bundles_post_ra>
// kernel: tpu_custom_call.1
= control target key start
LH: loop header
LB: loop body
LE: loop exit
PB: predicated region body
PF: predicated region fallthrough
CT: control target
= control target key end

     0   :  { %v1046_v0 = vmov 0   ;;  %vm38_vm2 = vcmask 64512   ;;  %vm177_vm5 = vcmask 7168   ;;  %vm268_vm6 = vcmask 1040384   ;;  %s1359_s1 = inlined_call_operand.vmem [shape: f32[2,16,1], index: 1, kind: input, shape index: {}]   ;;  %s1360_s5 = inlined_call_operand.<no memory space> [shape: f32[1,1], index: 5, kind: input, shape index: {}]   ;;  %s1361_s2 = inlined_call_operand.vmem [shape: f32[2,1,128], index: 2, kind: input, shape index: {}]   ;;  %s1362_s0 = inlined_call_operand.vmem [shape: f32[2,8,8], index: 0, kind: input, shape index: {}]   ;;  %s1363_s3 = inlined_call_operand.vmem [shape: f32[2,16,1], index: 3, kind: input, shape index: {}]   ;;  %s1364_s4 = inlined_call_operand.vmem [shape: f32[2,1,128], index: 4, kind: input, shape index: {}]   ;;  %s1365_s6 = inlined_call_operand.vmem [shape: f32[2,9,9], index: 6, kind: output, shape index: {}]  }
   0x1   :  { %903 = vset.pattern.permute.xlu1 %v1046_v0  ;;  %v42_v1 = vld [vmem:[%s1359_s1 + $0x8] sm:$0xff]  ;;  %902 = vset.pattern.permute.xlu0 %v1046_v0  ;;  %v11_v2 = vstv %s1360_s5  ;;  %v44_v3 = vld [vmem:[%s1359_s1 + $0x18] sm:$0xff]  ;;  %v43_v4 = vld [vmem:[%s1359_s1 + $0x10] sm:$0xff]  ;;  %vm891_vm7 = vcmask 72704   ;;  %vm893_vm8 = vcmask 65536  }
   0x2   :  { %54 = vperm.xlu1 %903, %v42_v1   ;;  %12 = vst [vmem:[#allocation3] sm:$0x1] %v11_v2  ;;  %904 = vset.pattern.permute.xlu2 %v1046_v0  ;;  %v41_v6 = vld [vmem:[%s1359_s1] sm:$0xff]  ;;  %v37_v15 = vld [vmem:[%s1362_s0 + $0x8] sm:$0xff]  ;;  %v1173_v2 = vld [vmem:[%s1363_s3 + $0x10] sm:$0xff] }
   0x3   :  { %64 = vperm.xlu2 %904, %v44_v3   ;;  %v906_v7 = vld [vmem:[%s1361_s2] ss:$0 sm:$0xff]  ;;  %v907_v8 = vld [vmem:[%s1361_s2 + $0x1] ss:$0 sm:$0xff]  ;;  %v1157_v54 = vld [vmem:[%s1363_s3 + $0x8] sm:$0xff] }
   0x4   :  { %v36_v18 = vld [vmem:[%s1362_s0] sm:$0xff] }
   0x5   :  { %v1162_v57 = vld [vmem:[%s1363_s3] sm:$0xff] }
   0x9   :  { %v905_v5 = vld [vmem:[#allocation3] ss:$0 sm:$0xff] }
   0xa   :  { %59 = vperm.xlu1 %903, %v43_v4   ;;  %29 = vperm.xlu0 %902, %v905_v5  }
  0x12   :  { %49 = vperm.xlu0 %902, %v41_v6   ;;  %v1178_v6 = vld [vmem:[%s1363_s3 + $0x18] sm:$0xff] }
  0x5d   :  { %v65_v10 = vpop.permute.xlu2 %64 }
  0x5e   :  { %v76_v12 = vadd.f32 %v907_v8, %v65_v10 }
  0x60   :  { %vm80_vm1 = vcmp.gt.f32.partialorder %v76_v12, 0.5 }
  0x74   :  { %v55_v9 = vpop.permute.xlu1 %54 }
  0x75   :  { %v74_v11 = vadd.f32 %v906_v7, %v55_v9 }
  0x77   :  { %vm78_vm0 = vcmp.gt.f32.partialorder %v74_v11, 0.5 }
  0x7c   :  { %v30_v13 = vpop.permute.xlu0 %29  ;;  %v60_v17 = vpop.permute.xlu1 %59 }
  0x7d   :  { %32 = vst [vmem:[#allocation2] sm:$0xff] %v30_v13  ;;  %v1103_v14 = vsel %vm80_vm1, -1e+12, %v30_v13  ;;  %v1108_v16 = vsel %vm78_vm0, -1e+12, %v30_v13  ;;  %v75_v19 = vadd.f32 %v907_v8, %v60_v17 }
  0x7e   :  { %34 = vst [vmem:[#allocation2 + $0x10] sm:$0xff] %v30_v13  ;;  %95 = vmax.xlane.f32.xlu0 %v1108_v16 }
  0x7f   :  { %92 = vst [vmem:[#allocation2 + $0x18] sm:$0xff] %v1103_v14  ;;  %vm79_vm3 = vcmp.gt.f32.partialorder %v75_v19, 0.5 }
  0x80   :  { %40 = vst.msk [vmem:[#allocation2 + $0x10] sm:$0xff] %vm38_vm2, %v37_v15 }
  0x81   :  { %39 = vst.msk [vmem:[#allocation2] sm:$0xff] %vm38_vm2, %v36_v18 }
  0x82   :  { %90 = vst [vmem:[#allocation2 + $0x8] sm:$0xff] %v1108_v16 }
  0x84   :  { %v50_v20 = vpop.permute.xlu0 %49 }
  0x85   :  { %v73_v21 = vadd.f32 %v906_v7, %v50_v20 }
  0x87   :  { %v83_v22 = vld [vmem:[#allocation2 + $0x10] sm:$0xff]  ;;  %vm77_vm4 = vcmp.gt.f32.partialorder %v73_v21, 0.5 }
  0x88   :  { %v1116_v23 = vsel %vm79_vm3, -1e+12, %v83_v22  ;;  %v81_v24 = vld [vmem:[#allocation2] sm:$0xff] }
  0x89   :  { %91 = vst [vmem:[#allocation2 + $0x10] sm:$0xff] %v1116_v23  ;;  %v1119_v25 = vsel %vm77_vm4, -1e+12, %v81_v24  ;;  %97 = vmax.xlane.f32.xlu1 %v1116_v23 }
  0x8a   :  { %89 = vst [vmem:[#allocation2] sm:$0xff] %v1119_v25  ;;  %93 = vmax.xlane.f32.xlu2 %v1119_v25 }
  0x92   :  { %99 = vmax.xlane.f32.xlu2 %v1103_v14 }
  0xf1   :  { %v1125_v26 = vpop.xlane.xlu0 %95 }
  0xf2   :  { %v116_v27 = vsub.f32 %v1108_v16, %v1125_v26 }
  0xf4   :  { %v121_v28 = vmul.f32 1.442695, %v116_v27 }
  0xf6   :  { %908 = vpow2.f32 %v121_v28 }
  0xfc   :  { %v1129_v29 = vpop.eup %908  ;;  %v1131_v30 = vpop.xlane.xlu1 %97 }
  0xfd   :  { %v117_v31 = vsub.f32 %v1116_v23, %v1131_v30  ;;  %v1135_v32 = vpop.xlane.xlu2 %93  ;;  %147 = vadd.xlane.f32.xlu0 %v1129_v29 }
  0xfe   :  { %v115_v33 = vsub.f32 %v1119_v25, %v1135_v32 }
  0xff   :  { %v123_v34 = vmul.f32 1.442695, %v117_v31 }
 0x100   :  { %v119_v35 = vmul.f32 1.442695, %v115_v33 }
 0x101   :  { %910 = vpow2.f32 %v123_v34 }
 0x102   :  { %912 = vpow2.f32 %v119_v35 }
 0x105   :  { %v1140_v36 = vpop.xlane.xlu2 %99 }
 0x106   :  { %v118_v37 = vsub.f32 %v1103_v14, %v1140_v36 }
 0x107   :  { %v1144_v38 = vpop.eup %910 }
 0x108   :  { %v1146_v39 = vpop.eup %912  ;;  %v125_v40 = vmul.f32 1.442695, %v118_v37  ;;  %149 = vadd.xlane.f32.xlu1 %v1144_v38 }
 0x109   :  { %145 = vadd.xlane.f32.xlu2 %v1146_v39 }
 0x10a   :  { %914 = vpow2.f32 %v125_v40 }
 0x110   :  { %v1150_v41 = vpop.eup %914 }
 0x111   :  { %151 = vadd.xlane.f32.xlu2 %v1150_v41 }
 0x170   :  { %v148_v42 = vpop.xlane.xlu0 %147 }
 0x171   :  { %v158_v43 = vmax.f32 %v148_v42, 1e-30 }
 0x173   :  { %916 = vlog2.f32 %v158_v43 }
 0x179   :  { %v917_v47 = vpop.eup %916 }
 0x17a   :  { %v164_v49 = vmul.f32 0.6931472, %v917_v47 }
 0x17b   :  { %v150_v44 = vpop.xlane.xlu1 %149 }
 0x17c   :  { %v159_v45 = vmax.f32 %v150_v44, 1e-30  ;;  %v146_v46 = vpop.xlane.xlu2 %145  ;;  %v170_v51 = vadd.f32 %v164_v49, %v1125_v26 }
 0x17d   :  { %v157_v48 = vmax.f32 %v146_v46, 1e-30 }
 0x17e   :  { %918 = vlog2.f32 %v159_v45  ;;  %v174_v58 = vsub.f32 %v1157_v54, %v170_v51 }
 0x17f   :  { %920 = vlog2.f32 %v157_v48  ;;  %v101_v48 = vmax.f32 %v1119_v25, %v1108_v16 }
 0x180   :  { %v179_v62 = vsel %vm177_vm5, %v174_v58, -inf }
 0x181   :  { %v102_v49 = vrot.slane %v101_v48, 4 }
 0x183   :  { %v103_v51 = vmax.f32 %v101_v48, %v102_v49 }
 0x184   :  { %v919_v50 = vpop.eup %918  ;;  %v152_v52 = vpop.xlane.xlu2 %151 }
 0x185   :  { %v921_v53 = vpop.eup %920  ;;  %v160_v55 = vmax.f32 %v152_v52, 1e-30  ;;  %v166_v59 = vmul.f32 0.6931472, %v919_v50  ;;  %v108_v50 = vmax.f32 %v1116_v23, %v1103_v14 }
 0x186   :  { %v162_v56 = vmul.f32 0.6931472, %v921_v53  ;;  %v104_v53 = vrot.slane %v103_v51, 2 }
 0x187   :  { %922 = vlog2.f32 %v160_v55  ;;  %v171_v63 = vadd.f32 %v166_v59, %v1131_v30  ;;  %v109_v52 = vrot.slane %v108_v50, 4 }
 0x188   :  { %v169_v60 = vadd.f32 %v162_v56, %v1135_v32  ;;  %v105_v56 = vmax.f32 %v103_v51, %v104_v53 }
 0x189   :  { %v175_v7 = vsub.f32 %v1173_v2, %v171_v63  ;;  %v110_v55 = vmax.f32 %v108_v50, %v109_v52  ;;  %v1217_v50 = vld [vmem:[%s1364_s4] sm:$0x1] }
 0x18a   :  { %v173_v61 = vsub.f32 %v1162_v57, %v169_v60  ;;  %v106_v59 = vrot.slane %v105_v56, 1 }
 0x18b   :  { %v187_v12 = vsel %vm177_vm5, %v175_v7, -inf }
 0x18c   :  { %v178_v0 = vsel %vm177_vm5, %v173_v61, -inf }
 0x18d   :  { %v923_v1 = vpop.eup %922  ;;  %v180_v3 = vmax.f32 %v178_v0, %v179_v62 }
 0x18e   :  { %v168_v4 = vmul.f32 0.6931472, %v923_v1 }
 0x18f   :  { %v181_v5 = vrot.slane %v180_v3, 4 }
 0x190   :  { %v172_v8 = vadd.f32 %v168_v4, %v1140_v36 }
 0x191   :  { %v182_v9 = vmax.f32 %v180_v3, %v181_v5 }
 0x192   :  { %v176_v10 = vsub.f32 %v1178_v6, %v172_v8 }
 0x193   :  { %v183_v11 = vrot.slane %v182_v9, 2 }
 0x194   :  { %v188_v13 = vsel %vm177_vm5, %v176_v10, -inf }
 0x195   :  { %v184_v15 = vmax.f32 %v182_v9, %v183_v11  ;;  %v189_v17 = vmax.f32 %v187_v12, %v188_v13 }
 0x197   :  { %v185_v18 = vrot.slane %v184_v15, 1  ;;  %v190_v19 = vrot.slane %v189_v17, 4 }
 0x199   :  { %v186_v20 = vmax.f32 %v184_v15, %v185_v18  ;;  %v191_v21 = vmax.f32 %v189_v17, %v190_v19 }
 0x19b   :  { %v196_v22 = vsub.f32 %v173_v61, %v186_v20  ;;  %v192_v24 = vrot.slane %v191_v21, 2  ;;  %v197_v27 = vsub.f32 %v174_v58, %v186_v20  ;;  %v111_v58 = vrot.slane %v110_v55, 2 }
 0x19c   :  { %v1189_v61 = vmax.f32 %v105_v56, %v106_v59 }
 0x19d   :  { %v200_v28 = vmul.f32 1.442695, %v196_v22  ;;  %v193_v31 = vmax.f32 %v191_v21, %v192_v24  ;;  %v202_v33 = vmul.f32 1.442695, %v197_v27  ;;  %v112_v60 = vmax.f32 %v110_v55, %v111_v58 }
 0x19e   :  { %v127_v63 = vsub.f32 %v1119_v25, %v1189_v61  ;;  %v128_v0 = vsub.f32 %v1108_v16, %v1189_v61 }
 0x19f   :  { %924 = vpow2.f32 %v200_v28  ;;  %v194_v34 = vrot.slane %v193_v31, 1  ;;  %v113_v62 = vrot.slane %v112_v60, 1 }
 0x1a0   :  { %926 = vpow2.f32 %v202_v33  ;;  %v131_v3 = vmul.f32 1.442695, %v127_v63  ;;  %v133_v4 = vmul.f32 1.442695, %v128_v0 }
 0x1a1   :  { %v195_v35 = vmax.f32 %v193_v31, %v194_v34  ;;  %v1195_v1 = vmax.f32 %v112_v60, %v113_v62  ;;  %v1225_v60 = vld [vmem:[%s1364_s4 + $0x1] sm:$0x1] }
 0x1a3   :  { %v199_v37 = vsub.f32 %v176_v10, %v195_v35  ;;  %v198_v40 = vsub.f32 %v175_v7, %v195_v35  ;;  %v129_v5 = vsub.f32 %v1116_v23, %v1195_v1  ;;  %v130_v7 = vsub.f32 %v1103_v14, %v1195_v1 }
 0x1a5   :  { %v925_v42 = vpop.eup %924  ;;  %v206_v43 = vmul.f32 1.442695, %v199_v37  ;;  %v204_v44 = vmul.f32 1.442695, %v198_v40  ;;  %v135_v8 = vmul.f32 1.442695, %v129_v5 }
 0x1a6   :  { %v927_v45 = vpop.eup %926  ;;  %210 = vperm.xlu0 %902, %v925_v42   ;;  %v137_v9 = vmul.f32 1.442695, %v130_v7 }
 0x1a7   :  { %928 = vpow2.f32 %v206_v43  ;;  %215 = vperm.xlu1 %903, %v927_v45  }
 0x1a8   :  { %930 = vpow2.f32 %v204_v44 }
 0x1a9   :  { %932 = vpow2.f32 %v131_v3 }
 0x1aa   :  { %934 = vpow2.f32 %v133_v4 }
 0x1ab   :  { %936 = vpow2.f32 %v135_v8 }
 0x1ac   :  { %938 = vpow2.f32 %v137_v9 }
 0x1ad   :  { %v929_v46 = vpop.eup %928 }
 0x1ae   :  { %v931_v47 = vpop.eup %930  ;;  %225 = vperm.xlu0 %902, %v929_v46  }
 0x1af   :  { %248 = vperm.xlu1 %903, %v186_v20   ;;  %220 = vperm.xlu2 %904, %v931_v47   ;;  %v1201_v10 = vpop.eup %932 }
 0x1b0   :  { %v1203_v11 = vpop.eup %934 }
 0x1b1   :  { %v1207_v14 = vpop.eup %936 }
 0x1b2   :  { %v1209_v18 = vpop.eup %938 }
 0x1b6   :  { %253 = vperm.xlu0 %902, %v195_v35  }
 0x209   :  { %v221_v15 = vpop.permute.xlu2 %220 }
 0x20a   :  { %v230_v21 = vmul.f32 %v1207_v14, %v221_v15 }
 0x218   :  { %v211_v25 = vpop.permute.xlu0 %210 }
 0x219   :  { %v216_v16 = vpop.permute.xlu1 %215  ;;  %v228_v12 = vmul.f32 %v1201_v10, %v211_v25 }
 0x21a   :  { %v229_v13 = vmul.f32 %v1203_v11, %v216_v16 }
 0x21c   :  { %v232_v23 = vadd.f32 %v229_v13, %v228_v12 }
 0x21e   :  { %v233_v17 = vrot.slane %v232_v23, 4 }
 0x220   :  { %v234_v19 = vadd.f32 %v233_v17, %v232_v23  ;;  %v226_v20 = vpop.permute.xlu0 %225 }
 0x221   :  { %v231_v22 = vmul.f32 %v1209_v18, %v226_v20  ;;  %v249_v45 = vpop.permute.xlu1 %248 }
 0x222   :  { %v235_v24 = vrot.slane %v234_v19, 2  ;;  %v256_v48 = vadd.f32 %v249_v45, %v1189_v61 }
 0x223   :  { %v239_v27 = vadd.f32 %v231_v22, %v230_v21 }
 0x224   :  { %v236_v28 = vadd.f32 %v235_v24, %v234_v19 }
 0x225   :  { %v240_v31 = vrot.slane %v239_v27, 4 }
 0x226   :  { %v237_v33 = vrot.slane %v236_v28, 1 }
 0x227   :  { %v241_v34 = vadd.f32 %v240_v31, %v239_v27 }
 0x228   :  { %v238_v35 = vadd.f32 %v237_v33, %v236_v28  ;;  %v254_v52 = vpop.permute.xlu0 %253 }
 0x229   :  { %v242_v37 = vrot.slane %v241_v34, 2  ;;  %v257_v58 = vadd.f32 %v254_v52, %v1195_v1 }
 0x22a   :  { %v258_v40 = vmax.f32 %v238_v35, 1e-30 }
 0x22b   :  { %v243_v42 = vadd.f32 %v242_v37, %v241_v34 }
 0x22c   :  { %940 = vlog2.f32 %v258_v40 }
 0x22d   :  { %v244_v43 = vrot.slane %v243_v42, 1 }
 0x22f   :  { %v245_v44 = vadd.f32 %v244_v43, %v243_v42 }
 0x231   :  { %v259_v46 = vmax.f32 %v245_v44, 1e-30 }
 0x232   :  { %v941_v47 = vpop.eup %940 }
 0x233   :  { %v261_v49 = vmul.f32 0.6931472, %v941_v47  ;;  %942 = vlog2.f32 %v259_v46 }
 0x235   :  { %v264_v51 = vadd.f32 %v261_v49, %v256_v48 }
 0x237   :  { %v266_v53 = vsub.f32 %v1217_v50, %v264_v51 }
 0x239   :  { %v943_v55 = vpop.eup %942  ;;  %v269_v56 = vsel %vm268_vm6, %v266_v53, -inf }
 0x23a   :  { %v263_v59 = vmul.f32 0.6931472, %v943_v55  ;;  %270 = vmax.xlane.f32.xlu2 %v269_v56 }
 0x23c   :  { %v265_v62 = vadd.f32 %v263_v59, %v257_v58 }
 0x23e   :  { %v267_v63 = vsub.f32 %v1225_v60, %v265_v62 }
 0x240   :  { %v272_v0 = vsel %vm268_vm6, %v267_v63, -inf }
 0x241   :  { %273 = vmax.xlane.f32.xlu1 %v272_v0 }
 0x2ad   :  { %v271_v3 = vpop.xlane.xlu2 %270 }
 0x2ae   :  { %v275_v4 = vsub.f32 %v266_v53, %v271_v3  ;;  %v299_v27 = vperm.slane %v271_v3, 0 }
 0x2b0   :  { %v277_v5 = vmul.f32 1.442695, %v275_v4  ;;  %v302_v40 = vadd.f32 %v299_v27, %v1125_v26  ;;  %v301_v43 = vadd.f32 %v299_v27, %v1135_v32 }
 0x2b2   :  { %944 = vpow2.f32 %v277_v5 }
 0x2b4   :  { %v274_v7 = vpop.xlane.xlu1 %273 }
 0x2b5   :  { %v276_v8 = vsub.f32 %v267_v63, %v274_v7  ;;  %v300_v46 = vperm.slane %v274_v7, 0 }
 0x2b7   :  { %v279_v9 = vmul.f32 1.442695, %v276_v8  ;;  %v303_v55 = vadd.f32 %v300_v46, %v1131_v30  ;;  %v304_v59 = vadd.f32 %v300_v46, %v1140_v36 }
 0x2b8   :  { %v945_v25 = vpop.eup %944 }
 0x2b9   :  { %946 = vpow2.f32 %v279_v9  ;;  %v282_v16 = vperm.slane %v945_v25, 0 }
 0x2bb   :  { %v285_v12 = vmul.f32 %v1129_v29, %v282_v16  ;;  %v284_v13 = vmul.f32 %v1146_v39, %v282_v16 }
 0x2bd   :  { %288 = vadd.xlane.f32.xlu2 %v285_v12  ;;  %286 = vadd.xlane.f32.xlu0 %v284_v13 }
 0x2bf   :  { %v947_v23 = vpop.eup %946 }
 0x2c0   :  { %v291_v15 = vperm.slane %v947_v23, 0 }
 0x2c2   :  { %v293_v17 = vmul.f32 %v1144_v38, %v291_v15  ;;  %v294_v19 = vmul.f32 %v1150_v41, %v291_v15 }
 0x2c4   :  { %295 = vadd.xlane.f32.xlu1 %v293_v17 }
 0x2c5   :  { %297 = vadd.xlane.f32.xlu0 %v294_v19 }
 0x330   :  { %v289_v20 = vpop.xlane.xlu2 %288  ;;  %v287_v21 = vpop.xlane.xlu0 %286 }
 0x331   :  { %v306_v22 = vmax.f32 %v289_v20, 1e-30  ;;  %v305_v24 = vmax.f32 %v287_v21, 1e-30 }
 0x333   :  { %948 = vlog2.f32 %v306_v22 }
 0x334   :  { %950 = vlog2.f32 %v305_v24 }
 0x337   :  { %v296_v28 = vpop.xlane.xlu1 %295 }
 0x338   :  { %v307_v31 = vmax.f32 %v296_v28, 1e-30  ;;  %v298_v33 = vpop.xlane.xlu0 %297 }
 0x339   :  { %v949_v34 = vpop.eup %948  ;;  %v308_v35 = vmax.f32 %v298_v33, 1e-30 }
 0x33a   :  { %v951_v37 = vpop.eup %950  ;;  %v312_v42 = vmul.f32 0.6931472, %v949_v34  ;;  %952 = vlog2.f32 %v307_v31 }
 0x33b   :  { %v310_v44 = vmul.f32 0.6931472, %v951_v37  ;;  %954 = vlog2.f32 %v308_v35 }
 0x33c   :  { %v318_v45 = vadd.f32 %v312_v42, %v302_v40 }
 0x33d   :  { %v317_v47 = vadd.f32 %v310_v44, %v301_v43 }
 0x33e   :  { %v322_v48 = vsub.f32 %v1157_v54, %v318_v45 }
 0x33f   :  { %v321_v49 = vsub.f32 %v1162_v57, %v317_v47 }
 0x340   :  { %v953_v51 = vpop.eup %952  ;;  %v326_v52 = vsel %vm177_vm5, %v322_v48, -inf }
 0x341   :  { %v955_v53 = vpop.eup %954  ;;  %v325_v56 = vsel %vm177_vm5, %v321_v49, -inf  ;;  %v314_v58 = vmul.f32 0.6931472, %v953_v51 }
 0x342   :  { %v327_v62 = vmax.f32 %v325_v56, %v326_v52  ;;  %v316_v63 = vmul.f32 0.6931472, %v955_v53 }
 0x343   :  { %v319_v0 = vadd.f32 %v314_v58, %v303_v55 }
 0x344   :  { %v328_v3 = vrot.slane %v327_v62, 4  ;;  %v320_v4 = vadd.f32 %v316_v63, %v304_v59 }
 0x345   :  { %v323_v5 = vsub.f32 %v1173_v2, %v319_v0 }
 0x346   :  { %v329_v7 = vmax.f32 %v327_v62, %v328_v3  ;;  %v324_v8 = vsub.f32 %v1178_v6, %v320_v4 }
 0x347   :  { %v334_v9 = vsel %vm177_vm5, %v323_v5, -inf }
 0x348   :  { %v330_v25 = vrot.slane %v329_v7, 2  ;;  %v335_v16 = vsel %vm177_vm5, %v324_v8, -inf }
 0x349   :  { %v336_v12 = vmax.f32 %v334_v9, %v335_v16 }
 0x34a   :  { %v331_v13 = vmax.f32 %v329_v7, %v330_v25 }
 0x34b   :  { %v337_v23 = vrot.slane %v336_v12, 4 }
 0x34c   :  { %v332_v15 = vrot.slane %v331_v13, 1 }
 0x34d   :  { %v338_v17 = vmax.f32 %v336_v12, %v337_v23 }
 0x34e   :  { %v333_v19 = vmax.f32 %v331_v13, %v332_v15 }
 0x34f   :  { %v339_v20 = vrot.slane %v338_v17, 2 }
 0x350   :  { %v343_v21 = vsub.f32 %v321_v49, %v333_v19  ;;  %v344_v22 = vsub.f32 %v322_v48, %v333_v19 }
 0x351   :  { %v340_v24 = vmax.f32 %v338_v17, %v339_v20 }
 0x352   :  { %v347_v27 = vmul.f32 1.442695, %v343_v21  ;;  %v349_v28 = vmul.f32 1.442695, %v344_v22 }
 0x353   :  { %v341_v31 = vrot.slane %v340_v24, 1 }
 0x354   :  { %956 = vpow2.f32 %v347_v27 }
 0x355   :  { %958 = vpow2.f32 %v349_v28  ;;  %v342_v33 = vmax.f32 %v340_v24, %v341_v31 }
 0x357   :  { %v345_v34 = vsub.f32 %v323_v5, %v342_v33  ;;  %v346_v35 = vsub.f32 %v324_v8, %v342_v33 }
 0x359   :  { %v351_v37 = vmul.f32 1.442695, %v345_v34  ;;  %v353_v40 = vmul.f32 1.442695, %v346_v35 }
 0x35a   :  { %v957_v42 = vpop.eup %956 }
 0x35b   :  { %v959_v43 = vpop.eup %958  ;;  %357 = vperm.xlu2 %904, %v957_v42   ;;  %960 = vpow2.f32 %v351_v37 }
 0x35c   :  { %362 = vperm.xlu1 %903, %v959_v43   ;;  %962 = vpow2.f32 %v353_v40 }
 0x361   :  { %v961_v44 = vpop.eup %960 }
 0x362   :  { %v963_v45 = vpop.eup %962  ;;  %367 = vperm.xlu0 %902, %v961_v44  }
 0x363   :  { %372 = vperm.xlu2 %904, %v963_v45  }
 0x364   :  { %400 = vperm.xlu1 %903, %v342_v33  }
 0x36a   :  { %395 = vperm.xlu0 %902, %v333_v19  }
 0x3b5   :  { %v358_v46 = vpop.permute.xlu2 %357 }
 0x3b6   :  { %v375_v48 = vmul.f32 %v1201_v10, %v358_v46 }
 0x3bd   :  { %v373_v52 = vpop.permute.xlu2 %372 }
 0x3be   :  { %v378_v56 = vmul.f32 %v1209_v18, %v373_v52 }
 0x3ce   :  { %v363_v47 = vpop.permute.xlu1 %362 }
 0x3cf   :  { %v376_v49 = vmul.f32 %v1203_v11, %v363_v47 }
 0x3d1   :  { %v379_v51 = vadd.f32 %v376_v49, %v375_v48 }
 0x3d3   :  { %v380_v53 = vrot.slane %v379_v51, 4 }
 0x3d4   :  { %v368_v55 = vpop.permute.xlu0 %367 }
 0x3d5   :  { %v381_v58 = vadd.f32 %v380_v53, %v379_v51  ;;  %v377_v59 = vmul.f32 %v1207_v14, %v368_v55 }
 0x3d6   :  { %v401_v21 = vpop.permute.xlu1 %400 }
 0x3d7   :  { %v382_v62 = vrot.slane %v381_v58, 2  ;;  %v386_v63 = vadd.f32 %v378_v56, %v377_v59  ;;  %v404_v27 = vadd.f32 %v401_v21, %v1195_v1 }
 0x3d9   :  { %v383_v0 = vadd.f32 %v382_v62, %v381_v58  ;;  %v387_v3 = vrot.slane %v386_v63, 4 }
 0x3db   :  { %v384_v4 = vrot.slane %v383_v0, 1  ;;  %v388_v5 = vadd.f32 %v387_v3, %v386_v63 }
 0x3dc   :  { %v396_v13 = vpop.permute.xlu0 %395 }
 0x3dd   :  { %v389_v7 = vrot.slane %v388_v5, 2  ;;  %v385_v8 = vadd.f32 %v384_v4, %v383_v0  ;;  %v403_v19 = vadd.f32 %v396_v13, %v1189_v61 }
 0x3df   :  { %v390_v9 = vadd.f32 %v389_v7, %v388_v5  ;;  %v405_v25 = vmax.f32 %v385_v8, 1e-30 }
 0x3e1   :  { %v391_v16 = vrot.slane %v390_v9, 1  ;;  %964 = vlog2.f32 %v405_v25 }
 0x3e3   :  { %v392_v12 = vadd.f32 %v391_v16, %v390_v9 }
 0x3e5   :  { %v406_v23 = vmax.f32 %v392_v12, 1e-30 }
 0x3e7   :  { %v965_v15 = vpop.eup %964  ;;  %966 = vlog2.f32 %v406_v23 }
 0x3e8   :  { %v408_v17 = vmul.f32 0.6931472, %v965_v15 }
 0x3ea   :  { %v411_v20 = vadd.f32 %v408_v17, %v403_v19 }
 0x3ec   :  { %v413_v22 = vsub.f32 %v1217_v50, %v411_v20 }
 0x3ed   :  { %v967_v24 = vpop.eup %966 }
 0x3ee   :  { %v415_v28 = vsel %vm268_vm6, %v413_v22, -inf  ;;  %v410_v31 = vmul.f32 0.6931472, %v967_v24 }
 0x3ef   :  { %416 = vmax.xlane.f32.xlu2 %v415_v28 }
 0x3f0   :  { %v412_v33 = vadd.f32 %v410_v31, %v404_v27 }
 0x3f2   :  { %v414_v34 = vsub.f32 %v1225_v60, %v412_v33 }
 0x3f4   :  { %v418_v35 = vsel %vm268_vm6, %v414_v34, -inf }
 0x3f5   :  { %419 = vmax.xlane.f32.xlu0 %v418_v35 }
 0x462   :  { %v417_v37 = vpop.xlane.xlu2 %416 }
 0x463   :  { %v421_v40 = vsub.f32 %v413_v22, %v417_v37  ;;  %v445_v63 = vperm.slane %v417_v37, 0 }
 0x465   :  { %v423_v42 = vmul.f32 1.442695, %v421_v40  ;;  %v448_v9 = vadd.f32 %v445_v63, %v1125_v26  ;;  %v447_v16 = vadd.f32 %v445_v63, %v1135_v32 }
 0x467   :  { %968 = vpow2.f32 %v423_v42 }
 0x468   :  { %v420_v43 = vpop.xlane.xlu0 %419 }
 0x469   :  { %v422_v44 = vsub.f32 %v414_v34, %v420_v43  ;;  %v446_v13 = vperm.slane %v420_v43, 0 }
 0x46b   :  { %v425_v45 = vmul.f32 1.442695, %v422_v44  ;;  %v449_v21 = vadd.f32 %v446_v13, %v1131_v30  ;;  %v450_v31 = vadd.f32 %v446_v13, %v1140_v36 }
 0x46d   :  { %v969_v46 = vpop.eup %968  ;;  %970 = vpow2.f32 %v425_v45 }
 0x46e   :  { %v428_v47 = vperm.slane %v969_v46, 0 }
 0x470   :  { %v431_v48 = vmul.f32 %v1129_v29, %v428_v47  ;;  %v430_v49 = vmul.f32 %v1146_v39, %v428_v47 }
 0x472   :  { %434 = vadd.xlane.f32.xlu2 %v431_v48  ;;  %432 = vadd.xlane.f32.xlu1 %v430_v49 }
 0x473   :  { %v971_v51 = vpop.eup %970 }
 0x474   :  { %v437_v52 = vperm.slane %v971_v51, 0 }
 0x476   :  { %v440_v53 = vmul.f32 %v1150_v41, %v437_v52  ;;  %v439_v55 = vmul.f32 %v1144_v38, %v437_v52 }
 0x478   :  { %441 = vadd.xlane.f32.xlu0 %v439_v55 }
 0x47a   :  { %443 = vadd.xlane.f32.xlu1 %v440_v53 }
 0x4e5   :  { %v435_v56 = vpop.xlane.xlu2 %434  ;;  %v433_v58 = vpop.xlane.xlu1 %432 }
 0x4e6   :  { %v452_v59 = vmax.f32 %v435_v56, 1e-30  ;;  %v451_v62 = vmax.f32 %v433_v58, 1e-30 }
 0x4e8   :  { %972 = vlog2.f32 %v452_v59 }
 0x4e9   :  { %974 = vlog2.f32 %v451_v62 }
 0x4eb   :  { %v442_v0 = vpop.xlane.xlu0 %441 }
 0x4ec   :  { %v453_v3 = vmax.f32 %v442_v0, 1e-30 }
 0x4ed   :  { %v444_v4 = vpop.xlane.xlu1 %443 }
 0x4ee   :  { %v973_v5 = vpop.eup %972  ;;  %v454_v7 = vmax.f32 %v444_v4, 1e-30  ;;  %976 = vlog2.f32 %v453_v3 }
 0x4ef   :  { %v975_v8 = vpop.eup %974  ;;  %v458_v25 = vmul.f32 0.6931472, %v973_v5 }
 0x4f0   :  { %v456_v12 = vmul.f32 0.6931472, %v975_v8  ;;  %978 = vlog2.f32 %v454_v7 }
 0x4f1   :  { %v464_v23 = vadd.f32 %v458_v25, %v448_v9 }
 0x4f2   :  { %v463_v15 = vadd.f32 %v456_v12, %v447_v16 }
 0x4f3   :  { %v468_v17 = vsub.f32 %v1157_v54, %v464_v23 }
 0x4f4   :  { %v977_v19 = vpop.eup %976  ;;  %v467_v20 = vsub.f32 %v1162_v57, %v463_v15 }
 0x4f5   :  { %v472_v22 = vsel %vm177_vm5, %v468_v17, -inf  ;;  %v460_v24 = vmul.f32 0.6931472, %v977_v19 }
 0x4f6   :  { %v979_v27 = vpop.eup %978  ;;  %v471_v28 = vsel %vm177_vm5, %v467_v20, -inf }
 0x4f7   :  { %v473_v33 = vmax.f32 %v471_v28, %v472_v22  ;;  %v462_v34 = vmul.f32 0.6931472, %v979_v27  ;;  %v465_v35 = vadd.f32 %v460_v24, %v449_v21 }
 0x4f9   :  { %v474_v37 = vrot.slane %v473_v33, 4  ;;  %v466_v40 = vadd.f32 %v462_v34, %v450_v31  ;;  %v469_v42 = vsub.f32 %v1173_v2, %v465_v35 }
 0x4fb   :  { %v475_v43 = vmax.f32 %v473_v33, %v474_v37  ;;  %v470_v44 = vsub.f32 %v1178_v6, %v466_v40  ;;  %v480_v45 = vsel %vm177_vm5, %v469_v42, -inf }
 0x4fd   :  { %v476_v46 = vrot.slane %v475_v43, 2  ;;  %v481_v47 = vsel %vm177_vm5, %v470_v44, -inf }
 0x4fe   :  { %v482_v48 = vmax.f32 %v480_v45, %v481_v47 }
 0x4ff   :  { %v477_v49 = vmax.f32 %v475_v43, %v476_v46 }
 0x500   :  { %v483_v51 = vrot.slane %v482_v48, 4 }
 0x501   :  { %v478_v52 = vrot.slane %v477_v49, 1 }
 0x502   :  { %v484_v53 = vmax.f32 %v482_v48, %v483_v51 }
 0x503   :  { %v479_v55 = vmax.f32 %v477_v49, %v478_v52 }
 0x504   :  { %v485_v56 = vrot.slane %v484_v53, 2 }
 0x505   :  { %v489_v58 = vsub.f32 %v467_v20, %v479_v55  ;;  %v490_v59 = vsub.f32 %v468_v17, %v479_v55 }
 0x506   :  { %v486_v62 = vmax.f32 %v484_v53, %v485_v56 }
 0x507   :  { %v493_v63 = vmul.f32 1.442695, %v489_v58  ;;  %v495_v0 = vmul.f32 1.442695, %v490_v59 }
 0x508   :  { %v487_v3 = vrot.slane %v486_v62, 1 }
 0x509   :  { %980 = vpow2.f32 %v493_v63 }
 0x50a   :  { %v488_v4 = vmax.f32 %v486_v62, %v487_v3  ;;  %982 = vpow2.f32 %v495_v0 }
 0x50c   :  { %v491_v5 = vsub.f32 %v469_v42, %v488_v4  ;;  %v492_v7 = vsub.f32 %v470_v44, %v488_v4 }
 0x50e   :  { %v497_v8 = vmul.f32 1.442695, %v491_v5  ;;  %v499_v9 = vmul.f32 1.442695, %v492_v7 }
 0x50f   :  { %v981_v25 = vpop.eup %980 }
 0x510   :  { %v983_v16 = vpop.eup %982  ;;  %984 = vpow2.f32 %v497_v8  ;;  %503 = vperm.xlu2 %904, %v981_v25  }
 0x511   :  { %508 = vperm.xlu0 %902, %v983_v16   ;;  %986 = vpow2.f32 %v499_v9 }
 0x516   :  { %v985_v12 = vpop.eup %984 }
 0x517   :  { %v987_v13 = vpop.eup %986  ;;  %513 = vperm.xlu1 %903, %v985_v12  }
 0x518   :  { %541 = vperm.xlu2 %904, %v479_v55  }
 0x519   :  { %518 = vperm.xlu0 %902, %v987_v13  }
 0x51f   :  { %546 = vperm.xlu1 %903, %v488_v4  }
 0x56a   :  { %v504_v23 = vpop.permute.xlu2 %503 }
 0x56b   :  { %v521_v17 = vmul.f32 %v1201_v10, %v504_v23 }
 0x572   :  { %v542_v48 = vpop.permute.xlu2 %541 }
 0x573   :  { %v549_v53 = vadd.f32 %v542_v48, %v1189_v61 }
 0x583   :  { %v509_v15 = vpop.permute.xlu0 %508 }
 0x584   :  { %v522_v19 = vmul.f32 %v1203_v11, %v509_v15 }
 0x586   :  { %v525_v20 = vadd.f32 %v522_v19, %v521_v17 }
 0x588   :  { %v526_v21 = vrot.slane %v525_v20, 4 }
 0x589   :  { %v514_v22 = vpop.permute.xlu1 %513 }
 0x58a   :  { %v527_v24 = vadd.f32 %v526_v21, %v525_v20  ;;  %v523_v27 = vmul.f32 %v1207_v14, %v514_v22 }
 0x58b   :  { %v519_v28 = vpop.permute.xlu0 %518 }
 0x58c   :  { %v528_v31 = vrot.slane %v527_v24, 2  ;;  %v524_v33 = vmul.f32 %v1209_v18, %v519_v28 }
 0x58e   :  { %v529_v34 = vadd.f32 %v528_v31, %v527_v24  ;;  %v532_v35 = vadd.f32 %v524_v33, %v523_v27 }
 0x590   :  { %v530_v37 = vrot.slane %v529_v34, 1  ;;  %v533_v40 = vrot.slane %v532_v35, 4 }
 0x591   :  { %v547_v59 = vpop.permute.xlu1 %546 }
 0x592   :  { %v531_v42 = vadd.f32 %v530_v37, %v529_v34  ;;  %v534_v43 = vadd.f32 %v533_v40, %v532_v35  ;;  %v550_v0 = vadd.f32 %v547_v59, %v1195_v1 }
 0x594   :  { %v535_v44 = vrot.slane %v534_v43, 2  ;;  %v551_v45 = vmax.f32 %v531_v42, 1e-30 }
 0x596   :  { %v536_v46 = vadd.f32 %v535_v44, %v534_v43  ;;  %988 = vlog2.f32 %v551_v45 }
 0x598   :  { %v537_v47 = vrot.slane %v536_v46, 1 }
 0x59a   :  { %v538_v49 = vadd.f32 %v537_v47, %v536_v46 }
 0x59c   :  { %v989_v51 = vpop.eup %988  ;;  %v552_v52 = vmax.f32 %v538_v49, 1e-30 }
 0x59d   :  { %v554_v55 = vmul.f32 0.6931472, %v989_v51 }
 0x59e   :  { %990 = vlog2.f32 %v552_v52 }
 0x59f   :  { %v557_v56 = vadd.f32 %v554_v55, %v549_v53 }
 0x5a1   :  { %v559_v58 = vsub.f32 %v1217_v50, %v557_v56 }
 0x5a3   :  { %v561_v62 = vsel %vm268_vm6, %v559_v58, -inf }
 0x5a4   :  { %v991_v63 = vpop.eup %990  ;;  %562 = vmax.xlane.f32.xlu0 %v561_v62 }
 0x5a5   :  { %v556_v3 = vmul.f32 0.6931472, %v991_v63 }
 0x5a7   :  { %v558_v4 = vadd.f32 %v556_v3, %v550_v0 }
 0x5a9   :  { %v560_v5 = vsub.f32 %v1225_v60, %v558_v4 }
 0x5ab   :  { %v564_v7 = vsel %vm268_vm6, %v560_v5, -inf }
 0x5ac   :  { %565 = vmax.xlane.f32.xlu2 %v564_v7 }
 0x617   :  { %v563_v8 = vpop.xlane.xlu0 %562 }
 0x618   :  { %v567_v9 = vsub.f32 %v559_v58, %v563_v8  ;;  %v591_v34 = vperm.slane %v563_v8, 0 }
 0x61a   :  { %v569_v25 = vmul.f32 1.442695, %v567_v9  ;;  %v594_v45 = vadd.f32 %v591_v34, %v1125_v26  ;;  %v593_v47 = vadd.f32 %v591_v34, %v1135_v32 }
 0x61c   :  { %992 = vpow2.f32 %v569_v25 }
 0x61f   :  { %v566_v16 = vpop.xlane.xlu2 %565 }
 0x620   :  { %v568_v12 = vsub.f32 %v560_v5, %v566_v16  ;;  %v592_v52 = vperm.slane %v566_v16, 0 }
 0x622   :  { %v993_v13 = vpop.eup %992  ;;  %v571_v23 = vmul.f32 1.442695, %v568_v12  ;;  %v595_v63 = vadd.f32 %v592_v52, %v1131_v30  ;;  %v596_v4 = vadd.f32 %v592_v52, %v1140_v36 }
 0x623   :  { %v574_v15 = vperm.slane %v993_v13, 0 }
 0x624   :  { %994 = vpow2.f32 %v571_v23 }
 0x625   :  { %v577_v17 = vmul.f32 %v1129_v29, %v574_v15  ;;  %v576_v19 = vmul.f32 %v1146_v39, %v574_v15 }
 0x627   :  { %580 = vadd.xlane.f32.xlu0 %v577_v17  ;;  %578 = vadd.xlane.f32.xlu1 %v576_v19 }
 0x62a   :  { %v995_v20 = vpop.eup %994 }
 0x62b   :  { %v583_v21 = vperm.slane %v995_v20, 0 }
 0x62d   :  { %v585_v22 = vmul.f32 %v1144_v38, %v583_v21  ;;  %v586_v24 = vmul.f32 %v1150_v41, %v583_v21 }
 0x62f   :  { %587 = vadd.xlane.f32.xlu2 %v585_v22  ;;  %589 = vadd.xlane.f32.xlu1 %v586_v24 }
 0x69a   :  { %v581_v27 = vpop.xlane.xlu0 %580  ;;  %v579_v28 = vpop.xlane.xlu1 %578 }
 0x69b   :  { %v598_v31 = vmax.f32 %v581_v27, 1e-30  ;;  %v597_v33 = vmax.f32 %v579_v28, 1e-30 }
 0x69d   :  { %996 = vlog2.f32 %v598_v31 }
 0x69e   :  { %998 = vlog2.f32 %v597_v33 }
 0x6a2   :  { %v588_v35 = vpop.xlane.xlu2 %587  ;;  %v590_v37 = vpop.xlane.xlu1 %589 }
 0x6a3   :  { %v997_v40 = vpop.eup %996  ;;  %v599_v42 = vmax.f32 %v588_v35, 1e-30  ;;  %v600_v43 = vmax.f32 %v590_v37, 1e-30 }
 0x6a4   :  { %v999_v44 = vpop.eup %998  ;;  %v604_v46 = vmul.f32 0.6931472, %v997_v40 }
 0x6a5   :  { %v602_v48 = vmul.f32 0.6931472, %v999_v44  ;;  %1000 = vlog2.f32 %v599_v42 }
 0x6a6   :  { %v610_v49 = vadd.f32 %v604_v46, %v594_v45  ;;  %1002 = vlog2.f32 %v600_v43 }
 0x6a7   :  { %v609_v51 = vadd.f32 %v602_v48, %v593_v47 }
 0x6a8   :  { %v614_v53 = vsub.f32 %v1157_v54, %v610_v49 }
 0x6a9   :  { %v613_v55 = vsub.f32 %v1162_v57, %v609_v51 }
 0x6aa   :  { %v618_v56 = vsel %vm177_vm5, %v614_v53, -inf }
 0x6ab   :  { %v1001_v58 = vpop.eup %1000  ;;  %v617_v59 = vsel %vm177_vm5, %v613_v55, -inf }
 0x6ac   :  { %v1003_v62 = vpop.eup %1002  ;;  %v619_v0 = vmax.f32 %v617_v59, %v618_v56  ;;  %v606_v3 = vmul.f32 0.6931472, %v1001_v58 }
 0x6ad   :  { %v608_v5 = vmul.f32 0.6931472, %v1003_v62 }
 0x6ae   :  { %v620_v7 = vrot.slane %v619_v0, 4  ;;  %v611_v8 = vadd.f32 %v606_v3, %v595_v63 }
 0x6af   :  { %v612_v9 = vadd.f32 %v608_v5, %v596_v4 }
 0x6b0   :  { %v621_v25 = vmax.f32 %v619_v0, %v620_v7  ;;  %v615_v54 = vsub.f32 %v1173_v2, %v611_v8 }
 0x6b1   :  { %v616_v57 = vsub.f32 %v1178_v6, %v612_v9 }
 0x6b2   :  { %v622_v16 = vrot.slane %v621_v25, 2  ;;  %v626_v12 = vsel %vm177_vm5, %v615_v54, -inf }
 0x6b3   :  { %v627_v13 = vsel %vm177_vm5, %v616_v57, -inf }
 0x6b4   :  { %v623_v23 = vmax.f32 %v621_v25, %v622_v16  ;;  %v628_v15 = vmax.f32 %v626_v12, %v627_v13 }
 0x6b6   :  { %v624_v17 = vrot.slane %v623_v23, 1  ;;  %v629_v19 = vrot.slane %v628_v15, 4 }
 0x6b8   :  { %v625_v20 = vmax.f32 %v623_v23, %v624_v17  ;;  %v630_v21 = vmax.f32 %v628_v15, %v629_v19 }
 0x6ba   :  { %v635_v22 = vsub.f32 %v613_v55, %v625_v20  ;;  %v631_v24 = vrot.slane %v630_v21, 2  ;;  %v636_v27 = vsub.f32 %v614_v53, %v625_v20 }
 0x6bc   :  { %v639_v28 = vmul.f32 1.442695, %v635_v22  ;;  %v632_v31 = vmax.f32 %v630_v21, %v631_v24  ;;  %v641_v33 = vmul.f32 1.442695, %v636_v27 }
 0x6be   :  { %1004 = vpow2.f32 %v639_v28  ;;  %v633_v2 = vrot.slane %v632_v31, 1 }
 0x6bf   :  { %1006 = vpow2.f32 %v641_v33 }
 0x6c0   :  { %v634_v6 = vmax.f32 %v632_v31, %v633_v2 }
 0x6c2   :  { %v638_v34 = vsub.f32 %v616_v57, %v634_v6  ;;  %v637_v35 = vsub.f32 %v615_v54, %v634_v6 }
 0x6c4   :  { %v1005_v37 = vpop.eup %1004  ;;  %v645_v40 = vmul.f32 1.442695, %v638_v34  ;;  %v643_v42 = vmul.f32 1.442695, %v637_v35 }
 0x6c5   :  { %v1007_v43 = vpop.eup %1006  ;;  %649 = vperm.xlu0 %902, %v1005_v37  }
 0x6c6   :  { %1008 = vpow2.f32 %v645_v40  ;;  %654 = vperm.xlu2 %904, %v1007_v43  }
 0x6c7   :  { %1010 = vpow2.f32 %v643_v42 }
 0x6cc   :  { %v1009_v44 = vpop.eup %1008 }
 0x6cd   :  { %v1011_v45 = vpop.eup %1010  ;;  %664 = vperm.xlu0 %902, %v1009_v44  }
 0x6ce   :  { %687 = vperm.xlu2 %904, %v625_v20   ;;  %659 = vperm.xlu1 %903, %v1011_v45  }
 0x6d5   :  { %692 = vperm.xlu0 %902, %v634_v6  }
 0x720   :  { %v655_v46 = vpop.permute.xlu2 %654 }
 0x721   :  { %v668_v48 = vmul.f32 %v1203_v11, %v655_v46 }
 0x728   :  { %v688_v57 = vpop.permute.xlu2 %687 }
 0x729   :  { %v695_v13 = vadd.f32 %v688_v57, %v1189_v61 }
 0x737   :  { %v650_v47 = vpop.permute.xlu0 %649 }
 0x738   :  { %v667_v49 = vmul.f32 %v1201_v10, %v650_v47 }
 0x73a   :  { %v671_v51 = vadd.f32 %v668_v48, %v667_v49 }
 0x73c   :  { %v672_v52 = vrot.slane %v671_v51, 4 }
 0x73e   :  { %v673_v53 = vadd.f32 %v672_v52, %v671_v51 }
 0x73f   :  { %v665_v55 = vpop.permute.xlu0 %664 }
 0x740   :  { %v674_v56 = vrot.slane %v673_v53, 2  ;;  %v670_v58 = vmul.f32 %v1209_v18, %v665_v55  ;;  %v660_v59 = vpop.permute.xlu1 %659 }
 0x741   :  { %v669_v62 = vmul.f32 %v1207_v14, %v660_v59 }
 0x742   :  { %v675_v63 = vadd.f32 %v674_v56, %v673_v53 }
 0x743   :  { %v678_v0 = vadd.f32 %v670_v58, %v669_v62 }
 0x744   :  { %v676_v3 = vrot.slane %v675_v63, 1 }
 0x745   :  { %v679_v4 = vrot.slane %v678_v0, 4 }
 0x746   :  { %v677_v5 = vadd.f32 %v676_v3, %v675_v63 }
 0x747   :  { %v680_v7 = vadd.f32 %v679_v4, %v678_v0  ;;  %v693_v20 = vpop.permute.xlu0 %692  ;;  %v1040_v4 = vld [vmem:[%s1363_s3 + $0x8] sm:$0xff] }
 0x748   :  { %v697_v8 = vmax.f32 %v677_v5, 1e-30  ;;  %v696_v24 = vadd.f32 %v693_v20, %v1195_v1 }
 0x749   :  { %v681_v9 = vrot.slane %v680_v7, 2 }
 0x74a   :  { %1012 = vlog2.f32 %v697_v8 }
 0x74b   :  { %v682_v25 = vadd.f32 %v681_v9, %v680_v7 }
 0x74d   :  { %v683_v54 = vrot.slane %v682_v25, 1 }
 0x74f   :  { %v684_v16 = vadd.f32 %v683_v54, %v682_v25 }
 0x750   :  { %v1013_v12 = vpop.eup %1012 }
 0x751   :  { %v698_v23 = vmax.f32 %v684_v16, 1e-30  ;;  %v700_v15 = vmul.f32 0.6931472, %v1013_v12 }
 0x753   :  { %1014 = vlog2.f32 %v698_v23  ;;  %v703_v17 = vadd.f32 %v700_v15, %v695_v13 }
 0x755   :  { %v705_v19 = vsub.f32 %v1217_v50, %v703_v17 }
 0x757   :  { %v707_v21 = vsel %vm268_vm6, %v705_v19, -inf }
 0x758   :  { %708 = vmax.xlane.f32.xlu1 %v707_v21  ;;  %v1042_v21 = vld [vmem:[%s1363_s3 + $0x18] sm:$0xff] }
 0x759   :  { %v1015_v22 = vpop.eup %1014 }
 0x75a   :  { %v702_v27 = vmul.f32 0.6931472, %v1015_v22 }
 0x75c   :  { %v704_v28 = vadd.f32 %v702_v27, %v696_v24  ;;  %v1043_v27 = vld [vmem:[%s1363_s3 + $0x10] sm:$0xff] }
 0x75e   :  { %v706_v31 = vsub.f32 %v1225_v60, %v704_v28 }
 0x760   :  { %v710_v33 = vsel %vm268_vm6, %v706_v31, -inf }
 0x761   :  { %711 = vmax.xlane.f32.xlu2 %v710_v33 }
 0x7cb   :  { %v709_v2 = vpop.xlane.xlu1 %708 }
 0x7cc   :  { %v713_v6 = vsub.f32 %v705_v19, %v709_v2  ;;  %v737_v53 = vperm.slane %v709_v2, 0 }
 0x7ce   :  { %v715_v34 = vmul.f32 1.442695, %v713_v6  ;;  %v740_v58 = vadd.f32 %v737_v53, %v1125_v26  ;;  %v1041_v26 = vld [vmem:[%s1363_s3] sm:$0xff] }
 0x7d0   :  { %1016 = vpow2.f32 %v715_v34 }
 0x7d4   :  { %v712_v35 = vpop.xlane.xlu2 %711 }
 0x7d5   :  { %v714_v50 = vsub.f32 %v706_v31, %v712_v35  ;;  %v738_v7 = vperm.slane %v712_v35, 0 }
 0x7d6   :  { %v1017_v37 = vpop.eup %1016 }
 0x7d7   :  { %v717_v40 = vmul.f32 1.442695, %v714_v50  ;;  %v720_v42 = vperm.slane %v1017_v37, 0  ;;  %v742_v16 = vadd.f32 %v738_v7, %v1140_v36  ;;  %v741_v13 = vadd.f32 %v738_v7, %v1131_v30 }
 0x7d9   :  { %1018 = vpow2.f32 %v717_v40  ;;  %v723_v43 = vmul.f32 %v1129_v29, %v720_v42  ;;  %v722_v44 = vmul.f32 %v1146_v39, %v720_v42 }
 0x7db   :  { %726 = vadd.xlane.f32.xlu2 %v723_v43  ;;  %724 = vadd.xlane.f32.xlu0 %v722_v44 }
 0x7df   :  { %v1019_v60 = vpop.eup %1018 }
 0x7e0   :  { %v729_v45 = vperm.slane %v1019_v60, 0 }
 0x7e2   :  { %v731_v46 = vmul.f32 %v1144_v38, %v729_v45  ;;  %v732_v47 = vmul.f32 %v1150_v41, %v729_v45  ;;  %v739_v41 = vadd.f32 %v737_v53, %v1135_v32 }
 0x7e4   :  { %733 = vadd.xlane.f32.xlu1 %v731_v46  ;;  %735 = vadd.xlane.f32.xlu0 %v732_v47 }
 0x84e   :  { %v727_v48 = vpop.xlane.xlu2 %726  ;;  %v725_v49 = vpop.xlane.xlu0 %724 }
 0x84f   :  { %v744_v51 = vmax.f32 %v727_v48, 1e-30  ;;  %v743_v52 = vmax.f32 %v725_v49, 1e-30 }
 0x851   :  { %1020 = vlog2.f32 %v744_v51 }
 0x852   :  { %1022 = vlog2.f32 %v743_v52 }
 0x857   :  { %v1021_v29 = vpop.eup %1020  ;;  %v736_v55 = vpop.xlane.xlu0 %735 }
 0x858   :  { %v734_v39 = vpop.xlane.xlu1 %733  ;;  %v1023_v56 = vpop.eup %1022  ;;  %v750_v59 = vmul.f32 0.6931472, %v1021_v29  ;;  %v746_v62 = vmax.f32 %v736_v55, 1e-30 }
 0x859   :  { %v745_v38 = vmax.f32 %v734_v39, 1e-30  ;;  %v748_v63 = vmul.f32 0.6931472, %v1023_v56 }
 0x85a   :  { %v756_v0 = vadd.f32 %v750_v59, %v740_v58  ;;  %1024 = vlog2.f32 %v746_v62 }
 0x85b   :  { %v755_v3 = vadd.f32 %v748_v63, %v739_v41  ;;  %1026 = vlog2.f32 %v745_v38 }
 0x85c   :  { %v760_v5 = vsub.f32 %v1040_v4, %v756_v0 }
 0x85d   :  { %v759_v8 = vsub.f32 %v1041_v26, %v755_v3 }
 0x85e   :  { %v764_v9 = vsel %vm177_vm5, %v760_v5, -inf }
 0x85f   :  { %v763_v32 = vsel %vm177_vm5, %v759_v8, -inf }
 0x860   :  { %v1025_v25 = vpop.eup %1024  ;;  %v765_v54 = vmax.f32 %v763_v32, %v764_v9 }
 0x861   :  { %v1027_v57 = vpop.eup %1026  ;;  %v754_v12 = vmul.f32 0.6931472, %v1025_v25 }
 0x862   :  { %v766_v23 = vrot.slane %v765_v54, 4  ;;  %v752_v15 = vmul.f32 0.6931472, %v1027_v57 }
 0x863   :  { %v758_v17 = vadd.f32 %v754_v12, %v742_v16 }
 0x864   :  { %v767_v19 = vmax.f32 %v765_v54, %v766_v23  ;;  %v757_v20 = vadd.f32 %v752_v15, %v741_v13 }
 0x865   :  { %v762_v22 = vsub.f32 %v1042_v21, %v758_v17 }
 0x866   :  { %v768_v24 = vrot.slane %v767_v19, 2  ;;  %v761_v28 = vsub.f32 %v1043_v27, %v757_v20  ;;  %v1044_v20 = vld [vmem:[%s1364_s4] sm:$0x1] }
 0x867   :  { %v773_v36 = vsel %vm177_vm5, %v762_v22, -inf }
 0x868   :  { %v769_v31 = vmax.f32 %v767_v19, %v768_v24  ;;  %v772_v30 = vsel %vm177_vm5, %v761_v28, -inf  ;;  %v854_v24 = vld [vmem:[#allocation2 + $0x8] sm:$0xff] }
 0x869   :  { %v774_v33 = vmax.f32 %v772_v30, %v773_v36 }
 0x86a   :  { %v770_v2 = vrot.slane %v769_v31, 1 }
 0x86b   :  { %v775_v6 = vrot.slane %v774_v33, 4 }
 0x86c   :  { %v771_v34 = vmax.f32 %v769_v31, %v770_v2 }
 0x86d   :  { %v776_v35 = vmax.f32 %v774_v33, %v775_v6 }
 0x86e   :  { %v781_v50 = vsub.f32 %v759_v8, %v771_v34  ;;  %v782_v37 = vsub.f32 %v760_v5, %v771_v34 }
 0x86f   :  { %v777_v40 = vrot.slane %v776_v35, 2 }
 0x870   :  { %v785_v42 = vmul.f32 1.442695, %v781_v50  ;;  %v787_v43 = vmul.f32 1.442695, %v782_v37  ;;  %v1045_v50 = vld [vmem:[%s1364_s4 + $0x1] sm:$0x1] }
 0x871   :  { %v778_v44 = vmax.f32 %v776_v35, %v777_v40  ;;  %v856_v37 = vld [vmem:[#allocation2 + $0x18] sm:$0xff]  ;;  %v855_v40 = vld [vmem:[#allocation2 + $0x10] sm:$0xff] }
 0x872   :  { %1028 = vpow2.f32 %v785_v42 }
 0x873   :  { %1030 = vpow2.f32 %v787_v43  ;;  %v779_v60 = vrot.slane %v778_v44, 1 }
 0x875   :  { %v780_v45 = vmax.f32 %v778_v44, %v779_v60 }
 0x877   :  { %v783_v46 = vsub.f32 %v761_v28, %v780_v45  ;;  %v784_v47 = vsub.f32 %v762_v22, %v780_v45 }
 0x878   :  { %v1029_v48 = vpop.eup %1028 }
 0x879   :  { %v1031_v49 = vpop.eup %1030  ;;  %795 = vperm.xlu2 %904, %v1029_v48   ;;  %v789_v51 = vmul.f32 1.442695, %v783_v46  ;;  %v791_v52 = vmul.f32 1.442695, %v784_v47 }
 0x87a   :  { %800 = vperm.xlu1 %903, %v1031_v49  }
 0x87b   :  { %1032 = vpow2.f32 %v789_v51 }
 0x87c   :  { %1034 = vpow2.f32 %v791_v52 }
 0x881   :  { %v1033_v53 = vpop.eup %1032 }
 0x882   :  { %v1035_v29 = vpop.eup %1034  ;;  %838 = vperm.xlu1 %903, %v780_v45   ;;  %805 = vperm.xlu0 %902, %v1033_v53  }
 0x883   :  { %810 = vperm.xlu2 %904, %v1035_v29  }
 0x88a   :  { %869 = vperm.xlu1 %903, %v761_v28   ;;  %833 = vperm.xlu0 %902, %v771_v34  }
 0x88b   :  { %859 = vperm.xlu2 %904, %v759_v8  }
 0x892   :  { %864 = vperm.xlu0 %902, %v760_v5  }
 0x893   :  { %874 = vperm.xlu2 %904, %v762_v22   ;;  %v853_v22 = vld [vmem:[#allocation2] sm:$0xff] }
 0x8d3   :  { %v796_v55 = vpop.permute.xlu2 %795 }
 0x8d4   :  { %v813_v56 = vmul.f32 %v1201_v10, %v796_v55 }
 0x8dd   :  { %v811_v38 = vpop.permute.xlu2 %810 }
 0x8de   :  { %v816_v0 = vmul.f32 %v1209_v18, %v811_v38 }
 0x8e5   :  { %v860_v15 = vpop.permute.xlu2 %859 }
 0x8e6   :  { %v877_v27 = vadd.f32 %v860_v15, %v853_v22 }
 0x8ec   :  { %v801_v39 = vpop.permute.xlu1 %800 }
 0x8ed   :  { %v814_v58 = vmul.f32 %v1203_v11, %v801_v39  ;;  %v875_v34 = vpop.permute.xlu2 %874 }
 0x8ee   :  { %v880_v42 = vadd.f32 %v875_v34, %v856_v37 }
 0x8ef   :  { %v817_v59 = vadd.f32 %v814_v58, %v813_v56 }
 0x8f1   :  { %v818_v62 = vrot.slane %v817_v59, 4 }
 0x8f3   :  { %v819_v41 = vadd.f32 %v818_v62, %v817_v59 }
 0x8f4   :  { %v806_v63 = vpop.permute.xlu0 %805 }
 0x8f5   :  { %v820_v3 = vrot.slane %v819_v41, 2  ;;  %v815_v4 = vmul.f32 %v1207_v14, %v806_v63  ;;  %v839_v14 = vpop.permute.xlu1 %838 }
 0x8f6   :  { %v842_v30 = vadd.f32 %v839_v14, %v1195_v1 }
 0x8f7   :  { %v821_v7 = vadd.f32 %v820_v3, %v819_v41  ;;  %v824_v26 = vadd.f32 %v816_v0, %v815_v4 }
 0x8f9   :  { %v822_v5 = vrot.slane %v821_v7, 1  ;;  %v825_v8 = vrot.slane %v824_v26, 4 }
 0x8fb   :  { %v826_v9 = vadd.f32 %v825_v8, %v824_v26  ;;  %v823_v32 = vadd.f32 %v822_v5, %v821_v7 }
 0x8fc   :  { %v834_v11 = vpop.permute.xlu0 %833 }
 0x8fd   :  { %v827_v25 = vrot.slane %v826_v9, 2  ;;  %v843_v10 = vmax.f32 %v823_v32, 1e-30  ;;  %v841_v18 = vadd.f32 %v834_v11, %v1189_v61  ;;  %v870_v35 = vpop.permute.xlu1 %869 }
 0x8fe   :  { %v879_v44 = vadd.f32 %v870_v35, %v855_v40 }
 0x8ff   :  { %v828_v54 = vadd.f32 %v827_v25, %v826_v9  ;;  %1036 = vlog2.f32 %v843_v10 }
 0x901   :  { %v829_v57 = vrot.slane %v828_v54, 1 }
 0x903   :  { %v830_v16 = vadd.f32 %v829_v57, %v828_v54 }
 0x904   :  { %v865_v19 = vpop.permute.xlu0 %864 }
 0x905   :  { %v1037_v12 = vpop.eup %1036  ;;  %v844_v13 = vmax.f32 %v830_v16, 1e-30  ;;  %v878_v28 = vadd.f32 %v865_v19, %v854_v24 }
 0x906   :  { %v846_v23 = vmul.f32 0.6931472, %v1037_v12 }
 0x907   :  { %1038 = vlog2.f32 %v844_v13 }
 0x908   :  { %v849_v17 = vadd.f32 %v846_v23, %v841_v18 }
 0x90a   :  { %v851_v21 = vsub.f32 %v1044_v20, %v849_v17 }
 0x90c   :  { %v883_v36 = vperm.slane %v851_v21, 0 }
 0x90d   :  { %v1039_v31 = vpop.eup %1038 }
 0x90e   :  { %v848_v61 = vmul.f32 0.6931472, %v1039_v31  ;;  %v887_v33 = vadd.f32 %v883_v36, %v877_v27  ;;  %v888_v2 = vadd.f32 %v883_v36, %v878_v28 }
 0x910   :  { %v850_v6 = vadd.f32 %v848_v61, %v842_v30  ;;  %892 = vst.msk [vmem:[%s1365_s6] sm:$0xff] %vm891_vm7, %v887_v33 }
 0x911   :  { %894 = vst.msk [vmem:[%s1365_s6 + $0x8] sm:$0x1] %vm893_vm8, %v888_v2 }
 0x912   :  { %v852_v1 = vsub.f32 %v1045_v50, %v850_v6 }
 0x914   :  { %v884_v43 = vperm.slane %v852_v1, 0 }
 0x916   :  { %v890_v60 = vadd.f32 %v884_v43, %v880_v42  ;;  %v889_v45 = vadd.f32 %v884_v43, %v879_v44 }
 0x918   :  { %895 = vst.msk [vmem:[%s1365_s6 + $0x10] sm:$0xff] %vm891_vm7, %v889_v45 }
 0x919   :  { %896 = vst.msk [vmem:[%s1365_s6 + $0x18] sm:$0x1] %vm893_vm8, %v890_v60 }

</bundles_post_ra>
